<compile_context>
chip_gen: v5e
topology: v5e:2x2
jax: 0.10.0
libtpu: 0.0.40
codegen_flags: <defaults>
</compile_context>

<pallas_src>
import functools

import jax
import jax.numpy as jnp
import numpy as np
from jax.experimental import pallas as pl
from jax.experimental.pallas import tpu as pltpu


def _round_up(x, m):
    return ((x + m - 1) // m) * m


def _auto_batch_tile(batch, s_pad, emb_dim, vocab_pad, k_dim, lw, n_pad, o_pad,
                     budget_bytes):
    """Largest multiple-of-8 batch tile whose per-step working set fits the
    VMEM budget (budget leaves headroom on v7x's 64 MiB VMEM)."""
    weights = 2 * 2 * (vocab_pad * emb_dim + k_dim * n_pad + n_pad * o_pad) \
        + 2 * 4 * (n_pad + o_pad + lw * n_pad)

    def tile_bytes(tb):
        one_hot = tb * s_pad * vocab_pad * 2       # bf16 one-hot matrix
        emb = tb * s_pad * emb_dim * 6             # f32 matmul result + bf16 copy
        im2col = tb * lw * k_dim * 2               # bf16 window matrix
        conv = tb * lw * n_pad * 4                 # f32 conv activations
        io = 2 * tb * (s_pad + o_pad) * 4          # double-buffered ids + output
        return one_hot + emb + im2col + conv + io

    tb = 8
    while tb < 256 and tb < batch and weights + tile_bytes(tb * 2) <= budget_bytes:
        tb *= 2
    return tb


def _textcnn_kernel(batch_tile, s_pad, lw, fs_max, vocab_pad, emb_dim,
                    tok_ref, emb_ref, w_ref, b_ref, mask_ref, wfc_ref,
                    bfc_ref, out_ref):
    """One batch tile: one-hot embed -> fused im2col conv -> relu/maxpool -> fc -> softmax."""
    # ---- embedding lookup as a single one-hot MXU matmul (no per-token DMA) ----
    ids = tok_ref[...]                                               # [TB, S_pad] int32
    iota = jax.lax.broadcasted_iota(jnp.int32, (batch_tile, s_pad, vocab_pad), 2)
    one_hot = (ids[:, :, None] == iota).astype(jnp.bfloat16)
    one_hot = one_hot.reshape(batch_tile * s_pad, vocab_pad)         # [TB*S_pad, Vp]
    emb = jnp.dot(one_hot, emb_ref[...], preferred_element_type=jnp.float32)
    x = emb.reshape(batch_tile, s_pad, emb_dim).astype(jnp.bfloat16)  # [TB, S_pad, E]

    # ---- fused conv over all filter sizes: one lane-dense im2col matmul ----
    win = jnp.concatenate([x[:, d:d + lw, :] for d in range(fs_max)], axis=-1)
    win = win.reshape(batch_tile * lw, fs_max * emb_dim)             # [TB*Lw, fs_max*E]
    conv = jnp.dot(win, w_ref[...], preferred_element_type=jnp.float32)
    conv = conv.reshape(batch_tile, lw, -1) + b_ref[...].reshape(1, 1, -1)
    conv = jnp.maximum(conv, 0.0)                                    # ReLU (f32, VPU)
    # Zero-out window positions past each filter's valid length L = S - fs + 1;
    # ReLU output is >= 0 so 0 is neutral for the max-pool.
    conv = conv * mask_ref[...].reshape(1, lw, -1)
    pooled = jnp.max(conv, axis=1)                                   # [TB, 128] (K*nf padded)

    # ---- fc + softmax (padded logit columns carry a -1e30 bias -> prob 0) --
    logits = jnp.dot(pooled.astype(jnp.bfloat16), wfc_ref[...],
                     preferred_element_type=jnp.float32) + bfc_ref[...]
    m = jnp.max(logits, axis=-1, keepdims=True)
    e = jnp.exp(logits - m)
    denom = jnp.sum(e, axis=-1, keepdims=True)
    out_ref[...] = (e * pl.reciprocal(denom, approx=True)).astype(out_ref.dtype)


def textcnn_forward(text, params, *, filter_sizes, n_filters, output_dim,
                    batch_tile=None, vmem_budget_bytes=48 * 1024 * 1024):
    """Embedding / weight packing + one gridded Pallas call."""
    filter_sizes = tuple(int(f) for f in filter_sizes)
    n_kinds = len(filter_sizes)
    fs_max, fs_min = max(filter_sizes), min(filter_sizes)
    batch, seq = text.shape
    vocab, emb_dim = params["embedding"].shape

    lw = seq - fs_min + 1                 # window positions shared by all filters
    s_pad = seq + (fs_max - fs_min)       # so the largest filter can read every window
    k_dim = fs_max * emb_dim              # fused contraction (128 for E=32, fs_max=4)
    kn = n_kinds * n_filters
    n_pad = _round_up(kn, 128)            # lane-dense conv output
    o_pad = _round_up(output_dim, 128)    # lane-dense logits / output
    vocab_pad = _round_up(vocab, 128)     # one-hot contraction / table sublanes

    if 2 * vocab_pad * emb_dim > vmem_budget_bytes // 4:
        # TODO(synk): large-vocab path (HBM table + chunked DMA gather) not implemented.
        raise ValueError("embedding table too large for the VMEM-resident one-hot path")

    # Fused conv weight [fs_max*E, n_pad]: filter k, tap d occupies rows
    # d*E:(d+1)*E and columns k*nf:(k+1)*nf; all other entries are zero.
    w_all = jnp.zeros((k_dim, n_pad), jnp.float32)
    b_all = jnp.zeros((1, n_pad), jnp.float32)
    for k, fs in enumerate(filter_sizes):
        w = params[f"conv_w_{k}"].astype(jnp.float32)                # [nf, fs, E]
        for d in range(fs):
            w_all = w_all.at[d * emb_dim:(d + 1) * emb_dim,
                             k * n_filters:(k + 1) * n_filters].set(w[:, d, :].T)
        b_all = b_all.at[:, k * n_filters:(k + 1) * n_filters].set(
            params[f"conv_b_{k}"].astype(jnp.float32))

    # Validity mask (static): position t is valid for filter k iff t < S-fs_k+1.
    mask_np = np.ones((lw, n_pad), np.float32)
    for k, fs in enumerate(filter_sizes):
        mask_np[seq - fs + 1:, k * n_filters:(k + 1) * n_filters] = 0.0
    mask = jnp.asarray(mask_np)

    # FC path, lane-padded. Padded logit columns get a -1e30 bias so softmax
    # gives them exactly-zero probability.
    wfc = jnp.zeros((n_pad, o_pad), jnp.float32).at[:kn, :output_dim].set(
        params["fc_w"].T.astype(jnp.float32))
    bfc = jnp.full((1, o_pad), -1e30, jnp.float32).at[:, :output_dim].set(
        params["fc_b"].astype(jnp.float32).reshape(1, -1))

    if batch_tile is None:
        batch_tile = _auto_batch_tile(batch, s_pad, emb_dim, vocab_pad, k_dim,
                                      lw, n_pad, o_pad, vmem_budget_bytes)
    batch_tile = _round_up(max(int(batch_tile), 8), 8)   # (8,128) rule for the out block
    b_padded = _round_up(batch, batch_tile)

    # Pad token ids: extra batch rows and the fs_max-fs_min sequence overhang
    # read token 0 (finite values; masked out / sliced away afterwards).
    text_p = jnp.pad(text.astype(jnp.int32),
                     ((0, b_padded - batch), (0, s_pad - seq)))

    # bf16 MXU inputs; biases / mask / accumulation stay f32.
    emb_tbl = jnp.zeros((vocab_pad, emb_dim), jnp.bfloat16).at[:vocab, :].set(
        params["embedding"].astype(jnp.bfloat16))
    w_all = w_all.astype(jnp.bfloat16)
    wfc = wfc.astype(jnp.bfloat16)

    kernel = functools.partial(_textcnn_kernel, batch_tile, s_pad, lw, fs_max,
                               vocab_pad, emb_dim)

    def full_block(shape):
        return pl.BlockSpec(shape, lambda i: (0, 0))

    out = pl.pallas_call(
        kernel,
        out_shape=jax.ShapeDtypeStruct((b_padded, o_pad), jnp.float32),
        grid_spec=pltpu.PrefetchScalarGridSpec(
            num_scalar_prefetch=0,
            grid=(b_padded // batch_tile,),
            in_specs=[
                pl.BlockSpec((batch_tile, s_pad), lambda i: (i, 0)),  # token ids
                full_block(emb_tbl.shape),               # embedding table   [Vp, E]
                full_block(w_all.shape),                 # fused conv weight [128, 128]
                full_block(b_all.shape),                 # fused conv bias   [1, 128]
                full_block(mask.shape),                  # pool validity mask[Lw, 128]
                full_block(wfc.shape),                   # fc weight         [128, 128]
                full_block(bfc.shape),                   # fc bias (+ -1e30) [1, 128]
            ],
            out_specs=pl.BlockSpec((batch_tile, o_pad), lambda i: (i, 0)),
        ),
        compiler_params=pltpu.CompilerParams(
            dimension_semantics=("parallel",),           # shard batch tiles over 2 TCs
            vmem_limit_bytes=vmem_budget_bytes,
        ),
    )(text_p, emb_tbl, w_all, b_all, mask, wfc, bfc)

    return out[:batch, :output_dim]


def _textcnn_reference(text, params, *, filter_sizes, n_filters, output_dim):
    """Pure-JAX f32 replica of the PyTorch module (validation only)."""
    emb = jnp.take(params["embedding"], text, axis=0)                # [B, S, E]
    pooled = []
    for k, fs in enumerate(filter_sizes):
        w = params[f"conv_w_{k}"]                                    # [nf, fs, E]
        b = params[f"conv_b_{k}"]                                    # [1, nf]
        length = emb.shape[1] - fs + 1
        acc = jnp.zeros((emb.shape[0], length, n_filters), jnp.float32)
        for d in range(fs):
            acc = acc + jnp.einsum("ble,fe->blf", emb[:, d:d + length, :], w[:, d, :])
        acc = jnp.maximum(acc + b.reshape(1, 1, -1), 0.0)
        pooled.append(jnp.max(acc, axis=1))
    cat = jnp.concatenate(pooled, axis=1)
    logits = cat @ params["fc_w"].T + params["fc_b"]
    return jax.nn.softmax(logits, axis=1)


if __name__ == "__main__":
    vocab_size = 50
    embedding_dim = 32          # fs_max * E = 128 -> native MXU contraction
    n_filters = 8
    filter_sizes = (2, 3, 4)
    output_dim = 4
    batch = 12                  # padded to 16 -> grid of 2 batch tiles of 8
    seq_len = 12
    dropout = 0.5               # identity at inference
    pad_idx = 0                 # reference nn.Embedding built without padding_idx

    key = jax.random.PRNGKey(0)
    keys = jax.random.split(key, 4 + 2 * len(filter_sizes))
    params = {
        "embedding": jax.random.normal(keys[0], (vocab_size, embedding_dim), jnp.float32),
        "fc_w": 0.1 * jax.random.normal(
            keys[1], (output_dim, len(filter_sizes) * n_filters), jnp.float32),
        "fc_b": 0.1 * jax.random.normal(keys[2], (1, output_dim), jnp.float32),
    }
    for i, fs in enumerate(filter_sizes):
        params[f"conv_w_{i}"] = 0.1 * jax.random.normal(
            keys[3 + 2 * i], (n_filters, fs, embedding_dim), jnp.float32)
        params[f"conv_b_{i}"] = 0.1 * jax.random.normal(
            keys[4 + 2 * i], (1, n_filters), jnp.float32)
    text = jax.random.randint(keys[-1], (batch, seq_len), 0, vocab_size, dtype=jnp.int32)

    out = textcnn_forward(
        text, params, filter_sizes=filter_sizes, n_filters=n_filters,
        output_dim=output_dim, batch_tile=8)
    out = jax.block_until_ready(out)

    ref = _textcnn_reference(
        text, params, filter_sizes=filter_sizes, n_filters=n_filters,
        output_dim=output_dim)

    assert out.shape == (batch, output_dim)
    assert bool(jnp.all(jnp.isfinite(out)))
    # softmax rows sum to ~1 (approx reciprocal on the EUP -> loose tolerance)
    assert bool(jnp.allclose(jnp.sum(out, axis=1), 1.0, atol=2e-2))
    # matches the f32 pure-JAX reference up to bf16 MXU rounding
    assert bool(jnp.allclose(out, ref, atol=5e-2))
    print("KERNEL_OK")
</pallas_src>

<mosaic_0001>
module attributes {stable_mosaic.version = 11 : i64} {
  func.func @_textcnn_kernel(%arg0: i32, %arg1: memref<8x14xi32, #tpu.memory_space<vmem>>, %arg2: memref<128x32xbf16, #tpu.memory_space<vmem>>, %arg3: memref<128x128xbf16, #tpu.memory_space<vmem>>, %arg4: memref<1x128xf32, #tpu.memory_space<vmem>>, %arg5: memref<11x128xf32, #tpu.memory_space<vmem>>, %arg6: memref<128x128xbf16, #tpu.memory_space<vmem>>, %arg7: memref<1x128xf32, #tpu.memory_space<vmem>>, %arg8: memref<8x128xf32, #tpu.memory_space<vmem>>) attributes {dimension_semantics = [#tpu.dimension_semantics<parallel>], iteration_bounds = array<i64: 2>, scalar_prefetch = 0 : i64, scratch_operands = 0 : i64, tpu.core_type = #tpu.core_type<tc>, window_params = [{transform_indices = @transform_0, window_bounds = array<i64: 8, 14>}, {pipeline_mode = #tpu.pipeline_mode<synchronous>, transform_indices = @transform_1, window_bounds = array<i64: 128, 32>}, {pipeline_mode = #tpu.pipeline_mode<synchronous>, transform_indices = @transform_2, window_bounds = array<i64: 128, 128>}, {pipeline_mode = #tpu.pipeline_mode<synchronous>, transform_indices = @transform_3, window_bounds = array<i64: 1, 128>}, {pipeline_mode = #tpu.pipeline_mode<synchronous>, transform_indices = @transform_4, window_bounds = array<i64: 11, 128>}, {pipeline_mode = #tpu.pipeline_mode<synchronous>, transform_indices = @transform_5, window_bounds = array<i64: 128, 128>}, {pipeline_mode = #tpu.pipeline_mode<synchronous>, transform_indices = @transform_6, window_bounds = array<i64: 1, 128>}, {transform_indices = @transform_7, window_bounds = array<i64: 8, 128>}]} {
    %c0 = arith.constant 0 : index
    %c0_0 = arith.constant 0 : index
    %0 = vector.load %arg1[%c0, %c0_0] : memref<8x14xi32, #tpu.memory_space<vmem>>, vector<8x14xi32>
    %1 = tpu.iota {dimensions = array<i32: 2>} : vector<8x14x128xi32>
    %2 = vector.shape_cast %0 : vector<8x14xi32> to vector<8x14x1xi32>
    %3 = vector.broadcast %2 : vector<8x14x1xi32> to vector<8x14x128xi32>
    %4 = arith.cmpi eq, %3, %1 : vector<8x14x128xi32>
    %5 = arith.extui %4 : vector<8x14x128xi1> to vector<8x14x128xi32>
    %6 = arith.sitofp %5 : vector<8x14x128xi32> to vector<8x14x128xf32>
    %7 = arith.truncf %6 : vector<8x14x128xf32> to vector<8x14x128xbf16>
    %8 = vector.shape_cast %7 : vector<8x14x128xbf16> to vector<112x128xbf16>
    %c0_1 = arith.constant 0 : index
    %c0_2 = arith.constant 0 : index
    %9 = vector.load %arg2[%c0_1, %c0_2] : memref<128x32xbf16, #tpu.memory_space<vmem>>, vector<128x32xbf16>
    %cst = arith.constant dense<0.000000e+00> : vector<112x32xf32>
    %10 = tpu.matmul %8, %9, %cst {dimension_numbers = #tpu.dot_dimension_numbers<[1], [0], [0], [1], [0, 0, 1, 1], [], []>} : vector<112x128xbf16>, vector<128x32xbf16>, vector<112x32xf32> -> vector<112x32xf32>
    %11 = vector.shape_cast %10 : vector<112x32xf32> to vector<8x14x32xf32>
    %12 = arith.truncf %11 : vector<8x14x32xf32> to vector<8x14x32xbf16>
    %13 = vector.extract_strided_slice %12 {offsets = [0, 0, 0], sizes = [8, 11, 32], strides = [1, 1, 1]} : vector<8x14x32xbf16> to vector<8x11x32xbf16>
    %14 = vector.extract_strided_slice %12 {offsets = [0, 1, 0], sizes = [8, 11, 32], strides = [1, 1, 1]} : vector<8x14x32xbf16> to vector<8x11x32xbf16>
    %15 = vector.extract_strided_slice %12 {offsets = [0, 2, 0], sizes = [8, 11, 32], strides = [1, 1, 1]} : vector<8x14x32xbf16> to vector<8x11x32xbf16>
    %16 = vector.extract_strided_slice %12 {offsets = [0, 3, 0], sizes = [8, 11, 32], strides = [1, 1, 1]} : vector<8x14x32xbf16> to vector<8x11x32xbf16>
    %17 = tpu.concatenate %13, %14, %15, %16 in 2 : vector<8x11x32xbf16>, vector<8x11x32xbf16>, vector<8x11x32xbf16>, vector<8x11x32xbf16> -> vector<8x11x128xbf16>
    %18 = vector.shape_cast %17 : vector<8x11x128xbf16> to vector<88x128xbf16>
    %c0_3 = arith.constant 0 : index
    %c0_4 = arith.constant 0 : index
    %19 = vector.load %arg3[%c0_3, %c0_4] : memref<128x128xbf16, #tpu.memory_space<vmem>>, vector<128x128xbf16>
    %cst_5 = arith.constant dense<0.000000e+00> : vector<88x128xf32>
    %20 = tpu.matmul %18, %19, %cst_5 {dimension_numbers = #tpu.dot_dimension_numbers<[1], [0], [0], [1], [0, 0, 1, 1], [], []>} : vector<88x128xbf16>, vector<128x128xbf16>, vector<88x128xf32> -> vector<88x128xf32>
    %21 = vector.shape_cast %20 : vector<88x128xf32> to vector<8x11x128xf32>
    %c0_6 = arith.constant 0 : index
    %c0_7 = arith.constant 0 : index
    %22 = vector.load %arg4[%c0_6, %c0_7] : memref<1x128xf32, #tpu.memory_space<vmem>>, vector<1x128xf32>
    %23 = vector.shape_cast %22 : vector<1x128xf32> to vector<1x1x128xf32>
    %24 = vector.broadcast %23 : vector<1x1x128xf32> to vector<8x11x128xf32>
    %25 = arith.addf %21, %24 : vector<8x11x128xf32>
    %cst_8 = arith.constant 0.000000e+00 : f32
    %26 = vector.broadcast %cst_8 : f32 to vector<8x11x128xf32>
    %27 = arith.maximumf %25, %26 : vector<8x11x128xf32>
    %c0_9 = arith.constant 0 : index
    %c0_10 = arith.constant 0 : index
    %28 = vector.load %arg5[%c0_9, %c0_10] : memref<11x128xf32, #tpu.memory_space<vmem>>, vector<11x128xf32>
    %29 = vector.shape_cast %28 : vector<11x128xf32> to vector<1x11x128xf32>
    %30 = vector.broadcast %29 : vector<1x11x128xf32> to vector<8x11x128xf32>
    %31 = arith.mulf %27, %30 : vector<8x11x128xf32>
    %cst_11 = arith.constant dense<0xFF800000> : vector<8x128xf32>
    %32 = vector.multi_reduction <maximumf>, %31, %cst_11 [1] : vector<8x11x128xf32> to vector<8x128xf32>
    %33 = arith.truncf %32 : vector<8x128xf32> to vector<8x128xbf16>
    %c0_12 = arith.constant 0 : index
    %c0_13 = arith.constant 0 : index
    %34 = vector.load %arg6[%c0_12, %c0_13] : memref<128x128xbf16, #tpu.memory_space<vmem>>, vector<128x128xbf16>
    %cst_14 = arith.constant dense<0.000000e+00> : vector<8x128xf32>
    %35 = tpu.matmul %33, %34, %cst_14 {dimension_numbers = #tpu.dot_dimension_numbers<[1], [0], [0], [1], [0, 0, 1, 1], [], []>} : vector<8x128xbf16>, vector<128x128xbf16>, vector<8x128xf32> -> vector<8x128xf32>
    %c0_15 = arith.constant 0 : index
    %c0_16 = arith.constant 0 : index
    %36 = vector.load %arg7[%c0_15, %c0_16] : memref<1x128xf32, #tpu.memory_space<vmem>>, vector<1x128xf32>
    %37 = vector.broadcast %36 : vector<1x128xf32> to vector<8x128xf32>
    %38 = arith.addf %35, %37 : vector<8x128xf32>
    %cst_17 = arith.constant dense<0xFF800000> : vector<8xf32>
    %39 = vector.multi_reduction <maximumf>, %38, %cst_17 [1] : vector<8x128xf32> to vector<8xf32>
    %40 = vector.shape_cast %39 : vector<8xf32> to vector<8x1xf32>
    %41 = vector.broadcast %40 : vector<8x1xf32> to vector<8x128xf32>
    %42 = arith.subf %38, %41 : vector<8x128xf32>
    %43 = math.exp %42 : vector<8x128xf32>
    %cst_18 = arith.constant dense<0.000000e+00> : vector<8xf32>
    %44 = vector.multi_reduction <add>, %43, %cst_18 [1] : vector<8x128xf32> to vector<8xf32>
    %45 = vector.shape_cast %44 : vector<8xf32> to vector<8x1xf32>
    %46 = tpu.reciprocal %45 {approx = true} : vector<8x1xf32> -> vector<8x1xf32>
    %47 = vector.broadcast %46 : vector<8x1xf32> to vector<8x128xf32>
    %48 = arith.mulf %43, %47 : vector<8x128xf32>
    %c0_19 = arith.constant 0 : index
    %c0_20 = arith.constant 0 : index
    %49 = vector.load %arg8[%c0_19, %c0_20] : memref<8x128xf32, #tpu.memory_space<vmem>>, vector<8x128xf32>
    tpu.vector_store %arg8[%c0_19, %c0_20], %48 {strides = array<i32>} : memref<8x128xf32, #tpu.memory_space<vmem>>, vector<8x128xf32>,
    return
  }
  func.func @transform_0(%arg0: i32) -> (i32, i32) {
    %c0_i32 = arith.constant 0 : i32
    %c0_i32_0 = arith.constant 0 : i32
    return %arg0, %c0_i32 : i32, i32
  }
  func.func @transform_1(%arg0: i32) -> (i32, i32) {
    %c0_i32 = arith.constant 0 : i32
    %c0_i32_0 = arith.constant 0 : i32
    %c0_i32_1 = arith.constant 0 : i32
    return %c0_i32, %c0_i32_0 : i32, i32
  }
  func.func @transform_2(%arg0: i32) -> (i32, i32) {
    %c0_i32 = arith.constant 0 : i32
    %c0_i32_0 = arith.constant 0 : i32
    %c0_i32_1 = arith.constant 0 : i32
    return %c0_i32, %c0_i32_0 : i32, i32
  }
  func.func @transform_3(%arg0: i32) -> (i32, i32) {
    %c0_i32 = arith.constant 0 : i32
    %c0_i32_0 = arith.constant 0 : i32
    %c0_i32_1 = arith.constant 0 : i32
    return %c0_i32, %c0_i32_0 : i32, i32
  }
  func.func @transform_4(%arg0: i32) -> (i32, i32) {
    %c0_i32 = arith.constant 0 : i32
    %c0_i32_0 = arith.constant 0 : i32
    %c0_i32_1 = arith.constant 0 : i32
    return %c0_i32, %c0_i32_0 : i32, i32
  }
  func.func @transform_5(%arg0: i32) -> (i32, i32) {
    %c0_i32 = arith.constant 0 : i32
    %c0_i32_0 = arith.constant 0 : i32
    %c0_i32_1 = arith.constant 0 : i32
    return %c0_i32, %c0_i32_0 : i32, i32
  }
  func.func @transform_6(%arg0: i32) -> (i32, i32) {
    %c0_i32 = arith.constant 0 : i32
    %c0_i32_0 = arith.constant 0 : i32
    %c0_i32_1 = arith.constant 0 : i32
    return %c0_i32, %c0_i32_0 : i32, i32
  }
  func.func @transform_7(%arg0: i32) -> (i32, i32) {
    %c0_i32 = arith.constant 0 : i32
    %c0_i32_0 = arith.constant 0 : i32
    return %arg0, %c0_i32 : i32, i32
  }
}

</mosaic_0001>

<bundles_post_ra>
// kernel: tpu_custom_call.1
= control target key start
LH: loop header
LB: loop body
LE: loop exit
PB: predicated region body
PF: predicated region fallthrough
CT: control target
= control target key end

     0   :  { %12 = vsyncpa [#allocation3], 0  ;;  %s3813_s0 = inlined_call_operand.vmem [shape: s32[16,14], index: 0, kind: input, shape index: {}]   ;;  %s3814_s1 = inlined_call_operand.vmem [shape: bf16[128,32], index: 1, kind: input, shape index: {}]   ;;  %s3815_s2 = inlined_call_operand.vmem [shape: bf16[128,128], index: 2, kind: input, shape index: {}]   ;;  %s3816_s3 = inlined_call_operand.vmem [shape: f32[1,128], index: 3, kind: input, shape index: {}]   ;;  %s3817_s4 = inlined_call_operand.hbm [shape: f32[11,128], index: 4, kind: input, shape index: {}]   ;;  %s3818_s5 = inlined_call_operand.hbm [shape: bf16[128,128], index: 5, kind: input, shape index: {}]   ;;  %s3819_s6 = inlined_call_operand.vmem [shape: f32[1,128], index: 6, kind: input, shape index: {}]   ;;  %s3820_s7 = inlined_call_operand.hbm [shape: f32[16,128], index: 7, kind: output, shape index: {}]  }
   0x1   :  { %13 = vsyncpa [#allocation6], 0 }
   0x2   :  { %14 = vsyncpa [#allocation4], 0 }
   0x3   :  { %16 = vsyncpa [#allocation4 + $0x1], 0  ;;  %s3123_s24 = smov 0   ;;  %s3125_s25 = smov 0  }
   0x4   :  { %s3127_s26 = smov 0   ;;  %s3129_s27 = smov 0  }
   0x5 LB: > { %s3144_s28 = sadd.s32 4294967295, %s3071_s27   ;;  %s2664_s29 = sadd.s32 4294967294, %s3071_s27   ;;  %s3071_s27 = sphi %s3129_s27, %s3827_s27   ;;  %s3067_s26 = sphi %s3127_s26, %s3826_s26   ;;  %s3063_s25 = sphi %s3125_s25, %s3825_s25   ;;  %s3059_s24 = sphi %s3123_s24, %s3824_s24  }
   0x6   : > { %s3148_s30 = sadd.s32 1, %s3071_s27   ;;  %s181_s8 = sadd.s32 1, %s3067_s26 }
   0x7   : > { %s178_s9 = ssub.s32 %s3071_s27, %s3148_s30  ;;  %p191_p0 = scmp.ne.s32.totalorder %s3067_s26, %s3063_s25 }
   0x8   : > { %p179_p1 = scmp.eq.s32.totalorder %s178_s9, 0  ;;  %p192_p2 = scmp.eq.s32.totalorder %s3144_s28, 1 }
   0x9   : > { %p197_p3 = scmp.ne.s32.totalorder %s3063_s25, %s3059_s24  ;;  %p198_p4 = scmp.eq.s32.totalorder %s2664_s29, 1 }
   0xa   : > { %s3159_s10 = scalar_select %p179_p1, %s3067_s26, %s181_s8  }
   0xb   : > { %p3161_p5 = por %p192_p2, %p191_p0  ;;  %p3165_p6 = por %p198_p4, %p197_p3 }
   0xc   : > { %p2665_p7 = scmp.ge.s32.totalorder %s3071_s27, 1  ;;  %p205_p8 = scmp.lt.s32.totalorder %s3071_s27, 3 }
   0xd   : > { %p2875_p9 = scmp.eq.s32.totalorder %s3144_s28, 0  ;;  %s225_s16 = sshll.u32 %s3817_s4, 4  ;;  %s226_s16 = int_to_ptr.hbm [resolvable:$true] %s225_s16 }
   0xe   : > { %p3172_p10 = pnand %p2665_p7, %p205_p8  ;;  %s3073_s17 = smov [#allocation2]  }
   0xf   : > { %s227_s18 = sshll.u32 %s3073_s17, 4  ;;  %s239_s21 = sshll.u32 %s3818_s5, 4  ;;  %s228_s18 = int_to_ptr.vmem [resolvable:$true] %s227_s18  ;;  %s240_s21 = int_to_ptr.hbm [resolvable:$true] %s239_s21 }
  0x10   : > { %p2864_p11 = pneg %p3172_p10  ;;  %s3074_s22 = smov 128  }
  0x11   : > { %s3075_s23 = smov 8   ;;  %s3076_s29 = smov [#allocation5]  }
  0x12   : > { %p2865_p12 = pnand %p2875_p9, %p2864_p11  ;;  %s241_s8 = sshll.u32 %s3076_s29, 4  ;;  %s242_s8 = int_to_ptr.vmem [resolvable:$true] %s241_s8 }
  0x13   : > { %s3077_s9 = smov 64   ;;  %s3078_s14 = smov 4  }
  0x14   : > { %2867 = dma.hbm_to_vmem [thread:$0]  (!%p2865_p12), %s226_s16, 256, %s228_s18, [#allocation3], %s3074_s22, %s3074_s22, %s3075_s23  }
  0x15   : > { %2870 = dma.hbm_to_vmem [thread:$0]  (!%p2865_p12), %s240_s21, 1024, %s242_s8, [#allocation6], %s3077_s9, %s3077_s9, %s3078_s14  }
  0x16   : > { %267 = sbr.rel (%p3172_p10) target bundleno = 1246 (0x4de), region = 48 }
  0x1b   : > { %3046 = dma.done.wait (%p2875_p9), [#allocation3], 256  }
  0x1c   : > { %3048 = vsyncadd (%p2875_p9), [#allocation3], 4294967040 }
  0x1d   : > { %3050 = dma.done.wait (%p2875_p9), [#allocation6], 1024  }
  0x1e   : > { %3052 = vsyncadd (%p2875_p9), [#allocation6], 4294966272  ;;  %v309_v0 = vlaneseq  ;;  %p304_p13 = scmp.lt.s32.totalorder %s3144_s28, 1  ;;  %v2821_v12 = vld [vmem:[%s3814_s1 + $0x38] sm:$0xff]  ;;  %v2820_v13 = vld [vmem:[%s3814_s1 + $0x30] sm:$0xff]  ;;  %v3079_v22 = vmov 0.0  }
  0x1f   : > { %864 = vmatpush.bf16.msra.mxu0 %v2821_v12  ;;  %2838 = vmatpush.bf16.msra.mxu3 %v2821_v12  ;;  %v2819_v14 = vld [vmem:[%s3814_s1 + $0x28] sm:$0xff]  ;;  %v2818_v15 = vld [vmem:[%s3814_s1 + $0x20] sm:$0xff]  ;;  %v2817_v16 = vld [vmem:[%s3814_s1 + $0x18] sm:$0xff]  ;;  %vm511_vm2 = vcmask 1040384   ;;  %vm515_vm3 = vcmask 1041409   ;;  %vm519_vm4 = vcmask 1042434  }
  0x20   : > { %v313_v1 = vshrl.u32 %v309_v0, 7  ;;  %s305_s15 = scalar_select %p304_p13, %s3144_s28, 1  ;;  %v2816_v17 = vld [vmem:[%s3814_s1 + $0x10] sm:$0xff]  ;;  %v3219_v18 = vand.u32 127, %v309_v0  ;;  %v2815_v21 = vld [vmem:[%s3814_s1 + $0x8] sm:$0xff]  ;;  %vm523_vm5 = vcmask 1043459  }
  0x21   : > { %v2814_v29 = vld [vmem:[%s3814_s1] sm:$0xff]  ;;  %s3080_s21 = smov 32   ;;  %s3081_s22 = smov 96  }
  0x22   : > { %2924 = vset.pattern.permute.xlu1 %v313_v1  ;;  %2922 = vset.pattern.permute.xlu0 %v313_v1  ;;  %s2673_s13 = sshll.u32 %s305_s15, 3  ;;  %v320_v6 = vadd.s32 8, %v313_v1  ;;  %s3082_s23 = smov 64  }
  0x23   : > { %s307_s18 = scalar_lea.vmem %s3813_s0, %s2673_s13  ;;  %2925 = vset.pattern.permute.xlu2 %v313_v1  ;;  %865 = vmatpush.bf16.msra.mxu0 %v2820_v13  ;;  %s301_s16 = sand.u32 1, %s3063_s25  }
  0x24   : > { %v308_v2 = vld [vmem:[%s307_s18] sm:$0xff]  ;;  %2839 = vmatpush.bf16.msra.mxu3 %v2820_v13  ;;  %s2672_s17 = sshll.u32 %s301_s16, 3  ;;  %s2811_s18 = sshll.u32 %s3144_s28, 3 }
  0x25   : > { %v324_v3 = vperm.slane %v308_v2, 1  ;;  %v311_v4 = vperm.slane %v308_v2, 0  ;;  %v337_v5 = vperm.slane %v308_v2, 2  ;;  %v350_v7 = vperm.slane %v308_v2, 3  ;;  %s2568_s8 = scalar_lea.sflag [#allocation4], %s301_s16  ;;  %s3021_s13 = scalar_lea.hbm %s3820_s7, 16 }
  0x26   : > { %v363_v8 = vperm.slane %v308_v2, 4  ;;  %v376_v9 = vperm.slane %v308_v2, 5  ;;  %v389_v10 = vperm.slane %v308_v2, 6  ;;  %v402_v11 = vperm.slane %v308_v2, 7 }
  0x27   : > { %866 = vmatpush.bf16.msra.mxu0 %v2819_v14 }
  0x28   : > { %2840 = vmatpush.bf16.msra.mxu3 %v2819_v14 }
  0x2a   : > { %329 = vperm.xlu1 %2924, %v324_v3   ;;  %316 = vperm.xlu0 %2922, %v311_v4  }
  0x2b   : > { %342 = vperm.xlu2 %2925, %v337_v5   ;;  %867 = vmatpush.bf16.msra.mxu0 %v2818_v15 }
  0x2c   : > { %2841 = vmatpush.bf16.msra.mxu3 %v2818_v15 }
  0x2f   : > { %868 = vmatpush.bf16.msra.mxu0 %v2817_v16 }
  0x30   : > { %2842 = vmatpush.bf16.msra.mxu3 %v2817_v16 }
  0x32   : > { %2926 = vset.pattern.permute.xlu1 %v320_v6  ;;  %2923 = vset.pattern.permute.xlu0 %v320_v6 }
  0x33   : > { %2928 = vset.pattern.permute.xlu2 %v320_v6  ;;  %869 = vmatpush.bf16.msra.mxu0 %v2816_v17 }
  0x34   : > { %2843 = vmatpush.bf16.msra.mxu3 %v2816_v17 }
  0x37   : > { %870 = vmatpush.bf16.msra.mxu0 %v2815_v21 }
  0x38   : > { %2844 = vmatpush.bf16.msra.mxu3 %v2815_v21 }
  0x3a   : > { %335 = vperm.xlu1 %2926, %v324_v3   ;;  %322 = vperm.xlu0 %2923, %v311_v4  }
  0x3b   : > { %348 = vperm.xlu2 %2928, %v337_v5   ;;  %871 = vmatpush.bf16.msra.mxu0 %v2814_v29 }
  0x3c   : > { %2845 = vmatpush.bf16.msra.mxu3 %v2814_v29 }
  0x42   : > { %2927 = vset.pattern.permute.xlu1 %v313_v1  ;;  %2929 = vset.pattern.permute.xlu0 %v313_v1 }
  0x43   : > { %361 = vperm.xlu2 %2928, %v350_v7  }
  0x4a   : > { %355 = vperm.xlu1 %2927, %v350_v7   ;;  %368 = vperm.xlu0 %2929, %v363_v8  }
  0x4b   : > { %2931 = vset.pattern.permute.xlu2 %v313_v1 }
  0x52   : > { %2930 = vset.pattern.permute.xlu1 %v320_v6  ;;  %2932 = vset.pattern.permute.xlu0 %v320_v6 }
  0x53   : > { %381 = vperm.xlu2 %2931, %v376_v9  }
  0x5a   : > { %374 = vperm.xlu1 %2930, %v363_v8   ;;  %400 = vperm.xlu0 %2932, %v389_v10  }
  0x5b   : > { %394 = vperm.xlu2 %2931, %v389_v10  }
  0x62   : > { %387 = vperm.xlu1 %2930, %v376_v9  }
  0x63   : > { %2934 = vset.pattern.permute.xlu2 %v320_v6 }
  0x6a   : > { %2933 = vset.pattern.permute.xlu1 %v313_v1 }
  0x6b   : > { %413 = vperm.xlu2 %2934, %v402_v11  }
  0x72   : > { %407 = vperm.xlu1 %2933, %v402_v11  }
  0x85   : > { %v343_v38 = vpop.permute.xlu2 %342 }
  0x86   : > { %vm419_vm6 = vcmp.eq.s32.totalorder %v343_v38, %v3219_v18 }
  0x87   : > { %v2678_v43 = vsel %vm419_vm6, 1.0, %v3079_v22 }
  0x88   : > { %v467_v45 = vpack.c.bf16 %v2678_v43, %v2678_v43 }
  0x8a   : > { %v499_v53 = vrot.slane %v467_v45, 3 }
  0x8c   : > { %v560_v58 = vsel %vm515_vm3, %v467_v45, %v499_v53  ;;  %v559_v4 = vsel %vm511_vm2, %v467_v45, %v499_v53  ;;  %v563_v21 = vsel %vm519_vm4, %v467_v45, %v499_v53 }
  0x8d   : > { %v562_v1 = vrot.slane %v560_v58, 1  ;;  %v565_v29 = vrot.slane %v563_v21, 2 }
  0x95   : > { %v349_v54 = vpop.permute.xlu2 %348 }
  0x96   : > { %vm420_vm9 = vcmp.eq.s32.totalorder %v349_v54, %v3219_v18 }
  0x97   : > { %v2679_v62 = vsel %vm420_vm9, 1.0, %v3079_v22  ;;  %vm1284_vm9 = vcmask 785408  }
  0x98   : > { %v468_v6 = vpack.c.bf16 %v2679_v62, %v2679_v62 }
  0x9a   : > { %v500_v11 = vrot.slane %v468_v6, 3 }
  0x9c   : > { %v317_v19 = vpop.permute.xlu0 %316  ;;  %v330_v20 = vpop.permute.xlu1 %329  ;;  %v572_v14 = vsel %vm515_vm3, %v468_v6, %v500_v11  ;;  %v575_v15 = vsel %vm519_vm4, %v468_v6, %v500_v11 }
  0x9d   : > { %vm415_vm0 = vcmp.eq.s32.totalorder %v317_v19, %v3219_v18  ;;  %vm417_vm1 = vcmp.eq.s32.totalorder %v330_v20, %v3219_v18  ;;  %v362_v13 = vpop.permute.xlu2 %361  ;;  %v571_v19 = vsel %vm511_vm2, %v468_v6, %v500_v11  ;;  %v574_v20 = vrot.slane %v572_v14, 1 }
  0x9e   : > { %v2674_v23 = vsel %vm415_vm0, 1.0, %v3079_v22  ;;  %v2676_v24 = vsel %vm417_vm1, 1.0, %v3079_v22  ;;  %vm422_vm11 = vcmp.eq.s32.totalorder %v362_v13, %v3219_v18 }
  0x9f   : > { %v463_v25 = vpack.c.bf16 %v2674_v23, %v2674_v23  ;;  %v465_v26 = vpack.c.bf16 %v2676_v24, %v2676_v24  ;;  %v566_v23 = vsel %vm523_vm5, %v467_v45, %v499_v53  ;;  %v577_v24 = vrot.slane %v575_v15, 2 }
  0xa1   : > { %v495_v27 = vrot.slane %v463_v25, 3  ;;  %v497_v28 = vrot.slane %v465_v26, 3 }
  0xa3   : > { %v514_v30 = vsel %vm511_vm2, %v463_v25, %v495_v27  ;;  %v516_v31 = vsel %vm515_vm3, %v463_v25, %v495_v27  ;;  %v520_v32 = vsel %vm519_vm4, %v463_v25, %v495_v27  ;;  %v524_v33 = vsel %vm523_vm5, %v463_v25, %v495_v27 }
  0xa4   : > { %v518_v34 = vrot.slane %v516_v31, 1  ;;  %v522_v35 = vrot.slane %v520_v32, 2  ;;  %v526_v36 = vrot.slane %v524_v33, 3  ;;  %699 = vst [vmem:[#allocation1] ss:$9 sm:$0xff] %v514_v30  ;;  %v538_v37 = vsel %vm511_vm2, %v465_v26, %v497_v28 }
  0xa5   : > { %718 = vst [vmem:[#allocation1 + $0x7] ss:$9 sm:$0xff] %v538_v37  ;;  %v539_v55 = vsel %vm515_vm3, %v465_v26, %v497_v28  ;;  %v542_v57 = vsel %vm519_vm4, %v465_v26, %v497_v28  ;;  %v545_v59 = vsel %vm523_vm5, %v465_v26, %v497_v28  ;;  %v2681_v27 = vsel %vm422_vm11, 1.0, %v3079_v22 }
  0xa6   : > { %702 = vst [vmem:[#allocation1 + $0x1] ss:$9 sm:$0xff] %v518_v34  ;;  %v541_v61 = vrot.slane %v539_v55, 1  ;;  %v544_v63 = vrot.slane %v542_v57, 2  ;;  %v547_v3 = vrot.slane %v545_v59, 3  ;;  %v568_v30 = vrot.slane %v566_v23, 3 }
  0xa7   : > { %705 = vst [vmem:[#allocation1 + $0x2] ss:$9 sm:$0xff] %v522_v35  ;;  %v470_v33 = vpack.c.bf16 %v2681_v27, %v2681_v27  ;;  %vm2486_vm11 = vcmask 1044484  }
  0xa8   : > { %708 = vst [vmem:[#allocation1 + $0x3] ss:$9 sm:$0xff] %v526_v36 }
  0xa9   : > { %v502_v37 = vrot.slane %v470_v33, 3 }
  0xab   : > { %v592_v45 = vsel %vm511_vm2, %v470_v33, %v502_v37 }
  0xac   : > { %v323_v39 = vpop.permute.xlu0 %322  ;;  %v336_v40 = vpop.permute.xlu1 %335 }
  0xad   : > { %vm416_vm7 = vcmp.eq.s32.totalorder %v323_v39, %v3219_v18  ;;  %vm418_vm8 = vcmp.eq.s32.totalorder %v336_v40, %v3219_v18 }
  0xae   : > { %v2675_v41 = vsel %vm416_vm7, 1.0, %v3079_v22  ;;  %v2677_v49 = vsel %vm418_vm8, 1.0, %v3079_v22  ;;  %vm1267_vm8 = vcmask 523264  }
  0xaf   : > { %v464_v42 = vpack.c.bf16 %v2675_v41, %v2675_v41  ;;  %v466_v52 = vpack.c.bf16 %v2677_v49, %v2677_v49  ;;  %v593_v41 = vsel %vm515_vm3, %v470_v33, %v502_v37 }
  0xb1   : > { %v496_v44 = vrot.slane %v464_v42, 3  ;;  %v498_v56 = vrot.slane %v466_v52, 3 }
  0xb3   : > { %v529_v46 = vsel %vm511_vm2, %v464_v42, %v496_v44  ;;  %v530_v47 = vsel %vm515_vm3, %v464_v42, %v496_v44  ;;  %v533_v48 = vsel %vm519_vm4, %v464_v42, %v496_v44  ;;  %v551_v2 = vsel %vm515_vm3, %v466_v52, %v498_v56  ;;  %v382_v42 = vpop.permute.xlu2 %381 }
  0xb4   : > { %v532_v50 = vrot.slane %v530_v47, 1  ;;  %v535_v51 = vrot.slane %v533_v48, 2  ;;  %710 = vst [vmem:[#allocation1 + $0x4] ss:$9 sm:$0xff] %v529_v46  ;;  %v554_v5 = vsel %vm519_vm4, %v466_v52, %v498_v56  ;;  %v550_v7 = vsel %vm511_vm2, %v466_v52, %v498_v56 }
  0xb5   : > { %v553_v8 = vrot.slane %v551_v2, 1  ;;  %v556_v9 = vrot.slane %v554_v5, 2  ;;  %v596_v44 = vsel %vm519_vm4, %v470_v33, %v502_v37  ;;  %v595_v46 = vrot.slane %v593_v41, 1 }
  0xb6   : > { %713 = vst [vmem:[#allocation1 + $0x5] ss:$9 sm:$0xff] %v532_v50  ;;  %vm425_vm14 = vcmp.eq.s32.totalorder %v382_v42, %v3219_v18  ;;  %v598_v50 = vrot.slane %v596_v44, 2 }
  0xb7   : > { %716 = vst [vmem:[#allocation1 + $0x6] ss:$9 sm:$0xff] %v535_v51  ;;  %v2684_v56 = vsel %vm425_vm14, 1.0, %v3079_v22  ;;  %vm2492_vm14 = vcmask 1047559  }
  0xbc   : > { %v356_v60 = vpop.permute.xlu1 %355  ;;  %v369_v17 = vpop.permute.xlu0 %368 }
  0xbd   : > { %vm421_vm10 = vcmp.eq.s32.totalorder %v356_v60, %v3219_v18  ;;  %vm423_vm12 = vcmp.eq.s32.totalorder %v369_v17, %v3219_v18  ;;  %v473_v60 = vpack.c.bf16 %v2684_v56, %v2684_v56 }
  0xbe   : > { %v719_v0 = vld [vmem:[#allocation1] sm:$0xff]  ;;  %v2680_v10 = vsel %vm421_vm10, 1.0, %v3079_v22  ;;  %v2682_v34 = vsel %vm423_vm12, 1.0, %v3079_v22  ;;  %vm2374_vm10 = vcmask 1042432   ;;  %vm2488_vm12 = vcmask 1045509  }
  0xbf   : > { %721 = vst [vmem:[#allocation1] ss:$9 sm:$0xff] %v541_v61  ;;  %872 = vmatmul.bf16.vlgmr.msra.gmra.mxu0 %v719_v0  ;;  %v469_v12 = vpack.c.bf16 %v2680_v10, %v2680_v10  ;;  %v471_v36 = vpack.c.bf16 %v2682_v34, %v2682_v34  ;;  %v505_v62 = vrot.slane %v473_v60, 3 }
  0xc0   : > { %723 = vst [vmem:[#allocation1 + $0x1] ss:$9 sm:$0xff] %v544_v63 }
  0xc1   : > { %725 = vst [vmem:[#allocation1 + $0x2] ss:$9 sm:$0xff] %v547_v3  ;;  %v501_v16 = vrot.slane %v469_v12, 3  ;;  %v503_v40 = vrot.slane %v471_v36, 3  ;;  %v623_v6 = vsel %vm515_vm3, %v473_v60, %v505_v62  ;;  %v629_v11 = vsel %vm523_vm5, %v473_v60, %v505_v62 }
  0xc2   : > { %731 = vst [vmem:[#allocation1 + $0x6] ss:$9 sm:$0xff] %v559_v4  ;;  %v625_v13 = vrot.slane %v623_v6, 1  ;;  %v631_v17 = vrot.slane %v629_v11, 3 }
  0xc3   : > { %733 = vst [vmem:[#allocation1 + $0x7] ss:$9 sm:$0xff] %v562_v1  ;;  %v581_v26 = vsel %vm515_vm3, %v469_v12, %v501_v16  ;;  %v584_v28 = vsel %vm519_vm4, %v469_v12, %v501_v16  ;;  %v580_v31 = vsel %vm511_vm2, %v469_v12, %v501_v16  ;;  %v587_v39 = vsel %vm523_vm5, %v469_v12, %v501_v16  ;;  %v395_v1 = vpop.permute.xlu2 %394 }
  0xc4   : > { %726 = vst [vmem:[#allocation1 + $0x3] ss:$9 sm:$0xff] %v550_v7  ;;  %v583_v32 = vrot.slane %v581_v26, 1  ;;  %v586_v35 = vrot.slane %v584_v28, 2  ;;  %v589_v43 = vrot.slane %v587_v39, 3  ;;  %v602_v47 = vsel %vm515_vm3, %v471_v36, %v503_v40 }
  0xc5   : > { %728 = vst [vmem:[#allocation1 + $0x4] ss:$9 sm:$0xff] %v553_v8  ;;  %v605_v51 = vsel %vm519_vm4, %v471_v36, %v503_v40  ;;  %v608_v52 = vsel %vm523_vm5, %v471_v36, %v503_v40  ;;  %v601_v53 = vsel %vm511_vm2, %v471_v36, %v503_v40  ;;  %v604_v54 = vrot.slane %v602_v47, 1 }
  0xc6   : > { %730 = vst [vmem:[#allocation1 + $0x5] ss:$9 sm:$0xff] %v556_v9  ;;  %v607_v57 = vrot.slane %v605_v51, 2  ;;  %v610_v59 = vrot.slane %v608_v52, 3  ;;  %vm427_vm0 = vcmp.eq.s32.totalorder %v395_v1, %v3219_v18  ;;  %v626_v8 = vsel %vm519_vm4, %v473_v60, %v505_v62 }
  0xc7   : > { %v622_v12 = vsel %vm511_vm2, %v473_v60, %v505_v62  ;;  %v2686_v15 = vsel %vm427_vm0, 1.0, %v3079_v22  ;;  %v628_v16 = vrot.slane %v626_v8, 2 }
  0xcb   : > { %v414_v26 = vpop.permute.xlu2 %413 }
  0xcc   : > { %v375_v38 = vpop.permute.xlu1 %374  ;;  %v401_v9 = vpop.permute.xlu0 %400  ;;  %vm430_vm6 = vcmp.eq.s32.totalorder %v414_v26, %v3219_v18 }
  0xcd   : > { %v734_v25 = vld [vmem:[#allocation1] sm:$0xff]  ;;  %vm424_vm13 = vcmp.eq.s32.totalorder %v375_v38, %v3219_v18  ;;  %vm428_vm1 = vcmp.eq.s32.totalorder %v401_v9, %v3219_v18  ;;  %v2689_v38 = vsel %vm430_vm6, 1.0, %v3079_v22 }
  0xce   : > { %739 = vst [vmem:[#allocation1 + $0x2] ss:$9 sm:$0xff] %v571_v19  ;;  %v2683_v48 = vsel %vm424_vm13, 1.0, %v3079_v22  ;;  %v475_v19 = vpack.c.bf16 %v2686_v15, %v2686_v15  ;;  %v2687_v21 = vsel %vm428_vm1, 1.0, %v3079_v22  ;;  %v478_v42 = vpack.c.bf16 %v2689_v38, %v2689_v38 }
  0xcf   : > { %741 = vst [vmem:[#allocation1 + $0x3] ss:$9 sm:$0xff] %v574_v20  ;;  %877 = vmatmul.bf16.gmra.mxu0 %v734_v25  ;;  %v472_v55 = vpack.c.bf16 %v2683_v48, %v2683_v48  ;;  %vm2490_vm13 = vcmask 1046534  }
  0xd0   : > { %743 = vst [vmem:[#allocation1 + $0x4] ss:$9 sm:$0xff] %v577_v24  ;;  %v507_v23 = vrot.slane %v475_v19, 3  ;;  %v476_v24 = vpack.c.bf16 %v2687_v21, %v2687_v21 }
  0xd1   : > { %736 = vst [vmem:[#allocation1] ss:$9 sm:$0xff] %v565_v29  ;;  %v504_v61 = vrot.slane %v472_v55, 3 }
  0xd2   : > { %738 = vst [vmem:[#allocation1 + $0x1] ss:$9 sm:$0xff] %v568_v30  ;;  %v644_v29 = vsel %vm515_vm3, %v475_v19, %v507_v23  ;;  %v508_v30 = vrot.slane %v476_v24, 3  ;;  %v647_v33 = vsel %vm519_vm4, %v475_v19, %v507_v23  ;;  %v650_v34 = vsel %vm523_vm5, %v475_v19, %v507_v23 }
  0xd3   : > { %744 = vst [vmem:[#allocation1 + $0x5] ss:$9 sm:$0xff] %v580_v31  ;;  %v614_v0 = vsel %vm515_vm3, %v472_v55, %v504_v61  ;;  %v617_v2 = vsel %vm519_vm4, %v472_v55, %v504_v61  ;;  %v613_v4 = vsel %vm511_vm2, %v472_v55, %v504_v61  ;;  %v643_v36 = vsel %vm511_vm2, %v475_v19, %v507_v23 }
  0xd4   : > { %746 = vst [vmem:[#allocation1 + $0x6] ss:$9 sm:$0xff] %v583_v32  ;;  %v388_v58 = vpop.permute.xlu1 %387  ;;  %v616_v5 = vrot.slane %v614_v0, 1  ;;  %v619_v7 = vrot.slane %v617_v2, 2  ;;  %v646_v37 = vrot.slane %v644_v29, 1  ;;  %v649_v39 = vrot.slane %v647_v33, 2 }
  0xd5   : > { %748 = vst [vmem:[#allocation1 + $0x7] ss:$9 sm:$0xff] %v586_v35  ;;  %vm426_vm15 = vcmp.eq.s32.totalorder %v388_v58, %v3219_v18  ;;  %v656_v40 = vsel %vm515_vm3, %v476_v24, %v508_v30  ;;  %v652_v41 = vrot.slane %v650_v34, 3  ;;  %v655_v44 = vsel %vm511_vm2, %v476_v24, %v508_v30 }
  0xd6   : > { %v2685_v63 = vsel %vm426_vm15, 1.0, %v3079_v22  ;;  %v659_v47 = vsel %vm519_vm4, %v476_v24, %v508_v30 }
  0xd7   : > { %v474_v3 = vpack.c.bf16 %v2685_v63, %v2685_v63 }
  0xd9   : > { %v506_v14 = vrot.slane %v474_v3, 3 }
  0xdb   : > { %v634_v20 = vsel %vm511_vm2, %v474_v3, %v506_v14  ;;  %v635_v25 = vsel %vm515_vm3, %v474_v3, %v506_v14  ;;  %v638_v27 = vsel %vm519_vm4, %v474_v3, %v506_v14 }
  0xdc   : > { %v749_v49 = vld [vmem:[#allocation1] sm:$0xff]  ;;  %v637_v28 = vrot.slane %v635_v25, 1  ;;  %v640_v32 = vrot.slane %v638_v27, 2 }
  0xdd   : > { %751 = vst [vmem:[#allocation1] ss:$9 sm:$0xff] %v589_v43 }
  0xde   : > { %752 = vst [vmem:[#allocation1 + $0x1] ss:$9 sm:$0xff] %v592_v45  ;;  %v658_v45 = vrot.slane %v656_v40, 1 }
  0xdf   : > { %754 = vst [vmem:[#allocation1 + $0x2] ss:$9 sm:$0xff] %v595_v46  ;;  %882 = vmatmul.bf16.gmra.mxu0 %v749_v49 }
  0xe0   : > { %756 = vst [vmem:[#allocation1 + $0x3] ss:$9 sm:$0xff] %v598_v50  ;;  %v661_v50 = vrot.slane %v659_v47, 2 }
  0xe1   : > { %757 = vst [vmem:[#allocation1 + $0x4] ss:$9 sm:$0xff] %v601_v53 }
  0xe2   : > { %759 = vst [vmem:[#allocation1 + $0x5] ss:$9 sm:$0xff] %v604_v54 }
  0xe3   : > { %761 = vst [vmem:[#allocation1 + $0x6] ss:$9 sm:$0xff] %v607_v57 }
  0xe4   : > { %763 = vst [vmem:[#allocation1 + $0x7] ss:$9 sm:$0xff] %v610_v59  ;;  %v408_v31 = vpop.permute.xlu1 %407 }
  0xe5   : > { %vm429_vm7 = vcmp.eq.s32.totalorder %v408_v31, %v3219_v18  ;;  %v510_v18 = vrot.slane %v478_v42, 3 }
  0xe6   : > { %v2688_v43 = vsel %vm429_vm7, 1.0, %v3079_v22 }
  0xe7   : > { %v477_v46 = vpack.c.bf16 %v2688_v43, %v2688_v43  ;;  %v677_v49 = vsel %vm515_vm3, %v478_v42, %v510_v18  ;;  %v680_v51 = vsel %vm519_vm4, %v478_v42, %v510_v18  ;;  %v676_v22 = vsel %vm511_vm2, %v478_v42, %v510_v18 }
  0xe8   : > { %v679_v52 = vrot.slane %v677_v49, 1  ;;  %v682_v55 = vrot.slane %v680_v51, 2 }
  0xe9   : > { %v509_v48 = vrot.slane %v477_v46, 3 }
  0xeb   : > { %v764_v10 = vld [vmem:[#allocation1] sm:$0xff]  ;;  %v665_v53 = vsel %vm515_vm3, %v477_v46, %v509_v48  ;;  %v668_v56 = vsel %vm519_vm4, %v477_v46, %v509_v48  ;;  %v671_v57 = vsel %vm523_vm5, %v477_v46, %v509_v48  ;;  %v664_v58 = vsel %vm511_vm2, %v477_v46, %v509_v48 }
  0xec   : > { %765 = vst [vmem:[#allocation1] ss:$9 sm:$0xff] %v613_v4  ;;  %v667_v59 = vrot.slane %v665_v53, 1  ;;  %v670_v60 = vrot.slane %v668_v56, 2  ;;  %v673_v61 = vrot.slane %v671_v57, 3  ;;  %vm1250_vm2 = vcmask 261120  }
  0xed   : > { %767 = vst [vmem:[#allocation1 + $0x1] ss:$9 sm:$0xff] %v616_v5 }
  0xee   : > { %769 = vst [vmem:[#allocation1 + $0x2] ss:$9 sm:$0xff] %v619_v7 }
  0xef   : > { %770 = vst [vmem:[#allocation1 + $0x3] ss:$9 sm:$0xff] %v622_v12  ;;  %887 = vmatmul.bf16.gmra.mxu0 %v764_v10 }
  0xf0   : > { %772 = vst [vmem:[#allocation1 + $0x4] ss:$9 sm:$0xff] %v625_v13 }
  0xf1   : > { %774 = vst [vmem:[#allocation1 + $0x5] ss:$9 sm:$0xff] %v628_v16 }
  0xf2   : > { %776 = vst [vmem:[#allocation1 + $0x6] ss:$9 sm:$0xff] %v631_v17 }
  0xf3   : > { %777 = vst [vmem:[#allocation1 + $0x7] ss:$9 sm:$0xff] %v634_v20 }
  0xfa   : > { %v778_v35 = vld [vmem:[#allocation1] sm:$0xff] }
  0xfb   : > { %780 = vst [vmem:[#allocation1] ss:$9 sm:$0xff] %v637_v28  ;;  %892 = vmatmul.bf16.vlgmr.msra.gmra.mxu3 %v778_v35 }
  0xfc   : > { %782 = vst [vmem:[#allocation1 + $0x1] ss:$9 sm:$0xff] %v640_v32 }
  0xfd   : > { %783 = vst [vmem:[#allocation1 + $0x2] ss:$9 sm:$0xff] %v643_v36 }
  0xfe   : > { %785 = vst [vmem:[#allocation1 + $0x3] ss:$9 sm:$0xff] %v646_v37 }
  0xff   : > { %787 = vst [vmem:[#allocation1 + $0x4] ss:$9 sm:$0xff] %v649_v39 }
 0x100   : > { %789 = vst [vmem:[#allocation1 + $0x5] ss:$9 sm:$0xff] %v652_v41 }
 0x101   : > { %790 = vst [vmem:[#allocation1 + $0x6] ss:$9 sm:$0xff] %v655_v44 }
 0x102   : > { %792 = vst [vmem:[#allocation1 + $0x7] ss:$9 sm:$0xff] %v658_v45 }
 0x109   : > { %v793_v54 = vld [vmem:[#allocation1] sm:$0xff] }
 0x10a   : > { %795 = vst [vmem:[#allocation1] ss:$9 sm:$0xff] %v661_v50 }
 0x10b   : > { %803 = vst [vmem:[#allocation1 + $0x5] ss:$9 sm:$0xff] %v676_v22  ;;  %897 = vmatmul.bf16.gmra.mxu3 %v793_v54 }
 0x10c   : > { %805 = vst [vmem:[#allocation1 + $0x6] ss:$9 sm:$0xff] %v679_v52 }
 0x10d   : > { %807 = vst [vmem:[#allocation1 + $0x7] ss:$9 sm:$0xff] %v682_v55 }
 0x10e   : > { %796 = vst [vmem:[#allocation1 + $0x1] ss:$9 sm:$0xff] %v664_v58 }
 0x10f   : > { %798 = vst [vmem:[#allocation1 + $0x2] ss:$9 sm:$0xff] %v667_v59 }
 0x110   : > { %800 = vst [vmem:[#allocation1 + $0x3] ss:$9 sm:$0xff] %v670_v60 }
 0x111   : > { %802 = vst [vmem:[#allocation1 + $0x4] ss:$9 sm:$0xff] %v673_v61 }
 0x118   : > { %v808_v62 = vld [vmem:[#allocation1] sm:$0xff] }
 0x11b   : > { %902 = vmatmul.bf16.gmra.mxu3 %v808_v62 }
 0x13c   : > { %v873_v63 = vpop.f32.mrf.mxu0 }
 0x13d   : > { %v922_v0 = vrot.slane %v873_v63, 2  ;;  %v923_v1 = vrot.slane %v873_v63, 4  ;;  %v924_v2 = vrot.slane %v873_v63, 6  ;;  %964 = vst [vmem:[#allocation1] ss:$4 sm:$0xff] %v873_v63 }
 0x13f   : > { %966 = vst [vmem:[#allocation1 + $0x1] ss:$4 sm:$0xff] %v922_v0 }
 0x140   : > { %968 = vst [vmem:[#allocation1 + $0x2] ss:$4 sm:$0xff] %v923_v1 }
 0x141   : > { %970 = vst [vmem:[#allocation1 + $0x3] ss:$4 sm:$0xff] %v924_v2 }
 0x144   : > { %v875_v3 = vpop.f32.mrf.mxu0 }
 0x145   : > { %v925_v4 = vrot.slane %v875_v3, 2  ;;  %v926_v5 = vrot.slane %v875_v3, 4  ;;  %v927_v6 = vrot.slane %v875_v3, 6  ;;  %972 = vst [vmem:[#allocation1 + $0x20] ss:$4 sm:$0xff] %v875_v3 }
 0x147   : > { %976 = vst [vmem:[#allocation1 + $0x22] ss:$4 sm:$0xff] %v926_v5 }
 0x148   : > { %v977_v7 = vld.sshfl [vmem:[#allocation1] sm:$0xff pattern:$0x73625140]  ;;  %974 = vst [vmem:[#allocation1 + $0x21] ss:$4 sm:$0xff] %v925_v4 }
 0x149   : > { %979 = vst [vmem:[#allocation1] ss:$4 sm:$0xff] %v927_v6  ;;  %v1058_v12 = vpack.c.bf16 %v977_v7, %v977_v7 }
 0x14b   : > { %v1090_v15 = vunpack.c.l.b16 %v1058_v12 }
 0x14c   : > { %v878_v8 = vpop.f32.mrf.mxu0 }
 0x14d   : > { %v928_v9 = vrot.slane %v878_v8, 2  ;;  %v929_v10 = vrot.slane %v878_v8, 4  ;;  %v930_v11 = vrot.slane %v878_v8, 6  ;;  %980 = vst [vmem:[#allocation1 + $0x1] ss:$4 sm:$0xff] %v878_v8 }
 0x14f   : > { %v978_v13 = vld.sshfl [vmem:[#allocation1 + $0x20] sm:$0xff pattern:$0x73625140]  ;;  %981 = vst [vmem:[#allocation1 + $0x2] ss:$4 sm:$0xff] %v928_v9 }
 0x150   : > { %982 = vst [vmem:[#allocation1 + $0x3] ss:$4 sm:$0xff] %v929_v10  ;;  %v1059_v14 = vpack.c.bf16 %v978_v13, %v978_v13 }
 0x151   : > { %983 = vst [vmem:[#allocation1 + $0x20] ss:$4 sm:$0xff] %v930_v11 }
 0x152   : > { %v1091_v16 = vunpack.c.l.b16 %v1059_v14 }
 0x154   : > { %v880_v17 = vpop.f32.mrf.mxu0  ;;  %v3315_v19 = vpack.c.b16 %v1091_v16, %v1090_v15 }
 0x155   : > { %v931_v20 = vrot.slane %v880_v17, 2  ;;  %v932_v21 = vrot.slane %v880_v17, 4  ;;  %v933_v23 = vrot.slane %v880_v17, 6  ;;  %984 = vst [vmem:[#allocation1 + $0x21] ss:$4 sm:$0xff] %v880_v17 }
 0x156   : > { %v1117_v24 = vshll.u32 %v3315_v19, 16  ;;  %v1115_v26 = vshrl.u32 %v3315_v19, 16  ;;  %v1186_v53 = vrot.slane %v3315_v19, 1 }
 0x157   : > { %v986_v25 = vld.sshfl [vmem:[#allocation1] sm:$0xff pattern:$0x73625140]  ;;  %985 = vst [vmem:[#allocation1 + $0x22] ss:$4 sm:$0xff] %v931_v20 }
 0x158   : > { %988 = vst [vmem:[#allocation1] ss:$4 sm:$0xff] %v932_v21  ;;  %v1119_v27 = vrot.slane %v1117_v24, 1  ;;  %v1060_v33 = vpack.c.bf16 %v986_v25, %v986_v25  ;;  %v1210_v35 = vrot.slane %v1115_v26, 1  ;;  %v1211_v36 = vrot.slane %v1117_v24, 2 }
 0x159   : > { %989 = vst [vmem:[#allocation1 + $0x1] ss:$4 sm:$0xff] %v933_v23 }
 0x15a   : > { %v1120_v28 = vor.u32 %v1119_v27, %v1115_v26  ;;  %v1092_v38 = vunpack.c.l.b16 %v1060_v33  ;;  %v1212_v40 = vor.u32 %v1211_v36, %v1210_v35 }
 0x15c   : > { %1170 = vrot.lane.b32.xlu0 %v1120_v28, %s3080_s21  ;;  %v883_v29 = vpop.f32.mrf.mxu0 }
 0x15d   : > { %v934_v30 = vrot.slane %v883_v29, 2  ;;  %v935_v31 = vrot.slane %v883_v29, 4  ;;  %v936_v32 = vrot.slane %v883_v29, 6  ;;  %990 = vst [vmem:[#allocation1 + $0x2] ss:$4 sm:$0xff] %v883_v29 }
 0x15e   : > { %v987_v34 = vld.sshfl [vmem:[#allocation1 + $0x20] sm:$0xff pattern:$0x73625140] }
 0x15f   : > { %991 = vst [vmem:[#allocation1 + $0x3] ss:$4 sm:$0xff] %v934_v30  ;;  %v1061_v37 = vpack.c.bf16 %v987_v34, %v987_v34 }
 0x160   : > { %992 = vst [vmem:[#allocation1 + $0x20] ss:$4 sm:$0xff] %v935_v31 }
 0x161   : > { %993 = vst [vmem:[#allocation1 + $0x21] ss:$4 sm:$0xff] %v936_v32  ;;  %v1093_v39 = vunpack.c.l.b16 %v1061_v37 }
 0x163   : > { %v3320_v41 = vpack.c.b16 %v1093_v39, %v1092_v38 }
 0x164   : > { %1234 = vrot.lane.b32.xlu0 %v1212_v40, %s3081_s22  ;;  %v885_v42 = vpop.f32.mrf.mxu0 }
 0x165   : > { %v937_v43 = vrot.slane %v885_v42, 2  ;;  %v938_v44 = vrot.slane %v885_v42, 4  ;;  %v939_v45 = vrot.slane %v885_v42, 6  ;;  %994 = vst [vmem:[#allocation1 + $0x22] ss:$4 sm:$0xff] %v885_v42  ;;  %v1187_v46 = vrot.slane %v3320_v41, 1 }
 0x166   : > { %v995_v18 = vld.sshfl [vmem:[#allocation1] sm:$0xff pattern:$0x73625140]  ;;  %v1124_v47 = vshll.u32 %v3320_v41, 16  ;;  %v1122_v48 = vshrl.u32 %v3320_v41, 16 }
 0x167   : > { %997 = vst [vmem:[#allocation1] ss:$4 sm:$0xff] %v937_v43  ;;  %1196 = vrot.lane.b32.xlu2 %v1187_v46, %s3082_s23  ;;  %v1062_v51 = vpack.c.bf16 %v995_v18, %v995_v18 }
 0x168   : > { %998 = vst [vmem:[#allocation1 + $0x1] ss:$4 sm:$0xff] %v938_v44  ;;  %v1126_v49 = vrot.slane %v1124_v47, 1  ;;  %v1213_v58 = vrot.slane %v1122_v48, 1  ;;  %v1214_v59 = vrot.slane %v1124_v47, 2 }
 0x169   : > { %999 = vst [vmem:[#allocation1 + $0x2] ss:$4 sm:$0xff] %v939_v45  ;;  %v1094_v60 = vunpack.c.l.b16 %v1062_v51 }
 0x16a   : > { %v1127_v50 = vor.u32 %v1126_v49, %v1122_v48  ;;  %v1215_v63 = vor.u32 %v1214_v59, %v1213_v58 }
 0x16c   : > { %v996_v22 = vld.sshfl [vmem:[#allocation1 + $0x20] sm:$0xff pattern:$0x73625140]  ;;  %1172 = vrot.lane.b32.xlu1 %v1127_v50, %s3080_s21  ;;  %v888_v52 = vpop.f32.mrf.mxu0 }
 0x16d   : > { %v940_v54 = vrot.slane %v888_v52, 2  ;;  %v941_v55 = vrot.slane %v888_v52, 4  ;;  %v942_v56 = vrot.slane %v888_v52, 6  ;;  %1000 = vst [vmem:[#allocation1 + $0x3] ss:$4 sm:$0xff] %v888_v52  ;;  %v1063_v57 = vpack.c.bf16 %v996_v22, %v996_v22 }
 0x16f   : > { %1001 = vst [vmem:[#allocation1 + $0x20] ss:$4 sm:$0xff] %v940_v54  ;;  %1194 = vrot.lane.b32.xlu2 %v1186_v53, %s3082_s23  ;;  %v1095_v61 = vunpack.c.l.b16 %v1063_v57 }
 0x170   : > { %1002 = vst [vmem:[#allocation1 + $0x21] ss:$4 sm:$0xff] %v941_v55 }
 0x171   : > { %1003 = vst [vmem:[#allocation1 + $0x22] ss:$4 sm:$0xff] %v942_v56  ;;  %v3330_v62 = vpack.c.b16 %v1095_v61, %v1094_v60 }
 0x173   : > { %v1129_v0 = vshrl.u32 %v3330_v62, 16  ;;  %v1131_v1 = vshll.u32 %v3330_v62, 16  ;;  %v1188_v4 = vrot.slane %v3330_v62, 1 }
 0x174   : > { %v1004_v2 = vld.sshfl [vmem:[#allocation1] sm:$0xff pattern:$0x73625140]  ;;  %1236 = vrot.lane.b32.xlu1 %v1215_v63, %s3081_s22  ;;  %v890_v3 = vpop.f32.mrf.mxu0 }
 0x175   : > { %v943_v5 = vrot.slane %v890_v3, 2  ;;  %v944_v6 = vrot.slane %v890_v3, 4  ;;  %v945_v7 = vrot.slane %v890_v3, 6  ;;  %1006 = vst [vmem:[#allocation1] ss:$4 sm:$0xff] %v890_v3  ;;  %v1216_v8 = vrot.slane %v1129_v0, 1 }
 0x176   : > { %v1217_v9 = vrot.slane %v1131_v1, 2  ;;  %v1133_v10 = vrot.slane %v1131_v1, 1  ;;  %v1064_v11 = vpack.c.bf16 %v1004_v2, %v1004_v2 }
 0x177   : > { %1007 = vst [vmem:[#allocation1 + $0x1] ss:$4 sm:$0xff] %v943_v5  ;;  %1198 = vrot.lane.b32.xlu2 %v1188_v4, %s3082_s23 }
 0x178   : > { %v1005_v12 = vld.sshfl [vmem:[#allocation1 + $0x20] sm:$0xff pattern:$0x73625140]  ;;  %1008 = vst [vmem:[#allocation1 + $0x2] ss:$4 sm:$0xff] %v944_v6  ;;  %v1218_v13 = vor.u32 %v1217_v9, %v1216_v8  ;;  %v1134_v15 = vor.u32 %v1133_v10, %v1129_v0  ;;  %v1096_v16 = vunpack.c.l.b16 %v1064_v11 }
 0x179   : > { %1009 = vst [vmem:[#allocation1 + $0x3] ss:$4 sm:$0xff] %v945_v7  ;;  %v1065_v14 = vpack.c.bf16 %v1005_v12, %v1005_v12 }
 0x17a   : > { %1238 = vrot.lane.b32.xlu0 %v1218_v13, %s3081_s22 }
 0x17b   : > { %v1097_v17 = vunpack.c.l.b16 %v1065_v14 }
 0x17c   : > { %1174 = vrot.lane.b32.xlu1 %v1134_v15, %s3080_s21 }
 0x17d   : > { %v3339_v20 = vpack.c.b16 %v1097_v17, %v1096_v16 }
 0x17e   : > { %v893_v21 = vpop.f32.mrf.mxu3 }
 0x17f   : > { %v946_v23 = vrot.slane %v893_v21, 2  ;;  %v947_v24 = vrot.slane %v893_v21, 4  ;;  %v948_v25 = vrot.slane %v893_v21, 6  ;;  %1010 = vst [vmem:[#allocation1 + $0x20] ss:$4 sm:$0xff] %v893_v21  ;;  %v1189_v26 = vrot.slane %v3339_v20, 1 }
 0x180   : > { %v1013_v27 = vld.sshfl [vmem:[#allocation1] sm:$0xff pattern:$0x73625140]  ;;  %v1136_v28 = vshrl.u32 %v3339_v20, 16  ;;  %v1138_v29 = vshll.u32 %v3339_v20, 16 }
 0x181   : > { %1012 = vst [vmem:[#allocation1 + $0x22] ss:$4 sm:$0xff] %v947_v24  ;;  %1200 = vrot.lane.b32.xlu2 %v1189_v26, %s3082_s23  ;;  %v1066_v36 = vpack.c.bf16 %v1013_v27, %v1013_v27 }
 0x182   : > { %1011 = vst [vmem:[#allocation1 + $0x21] ss:$4 sm:$0xff] %v946_v23  ;;  %v1219_v30 = vrot.slane %v1136_v28, 1  ;;  %v1220_v31 = vrot.slane %v1138_v29, 2  ;;  %v1140_v32 = vrot.slane %v1138_v29, 1 }
 0x183   : > { %1015 = vst [vmem:[#allocation1] ss:$4 sm:$0xff] %v948_v25  ;;  %v1098_v43 = vunpack.c.l.b16 %v1066_v36 }
 0x184   : > { %v1221_v33 = vor.u32 %v1220_v31, %v1219_v30  ;;  %v1141_v34 = vor.u32 %v1140_v32, %v1136_v28 }
 0x186   : > { %v895_v35 = vpop.f32.mrf.mxu3  ;;  %1240 = vrot.lane.b32.xlu0 %v1221_v33, %s3081_s22  ;;  %1176 = vrot.lane.b32.xlu1 %v1141_v34, %s3080_s21 }
 0x187   : > { %v949_v37 = vrot.slane %v895_v35, 2  ;;  %v950_v38 = vrot.slane %v895_v35, 4  ;;  %v951_v39 = vrot.slane %v895_v35, 6  ;;  %1016 = vst [vmem:[#allocation1 + $0x1] ss:$4 sm:$0xff] %v895_v35 }
 0x189   : > { %v1014_v40 = vld.sshfl [vmem:[#allocation1 + $0x20] sm:$0xff pattern:$0x73625140]  ;;  %1018 = vst [vmem:[#allocation1 + $0x3] ss:$4 sm:$0xff] %v950_v38 }
 0x18a   : > { %1019 = vst [vmem:[#allocation1 + $0x20] ss:$4 sm:$0xff] %v951_v39  ;;  %v1067_v42 = vpack.c.bf16 %v1014_v40, %v1014_v40 }
 0x18b   : > { %1017 = vst [vmem:[#allocation1 + $0x2] ss:$4 sm:$0xff] %v949_v37 }
 0x18c   : > { %v1099_v44 = vunpack.c.l.b16 %v1067_v42 }
 0x18e   : > { %v898_v45 = vpop.f32.mrf.mxu3  ;;  %v3347_v46 = vpack.c.b16 %v1099_v44, %v1098_v43 }
 0x18f   : > { %v952_v18 = vrot.slane %v898_v45, 2  ;;  %1020 = vst [vmem:[#allocation1 + $0x21] ss:$4 sm:$0xff] %v898_v45  ;;  %v953_v50 = vrot.slane %v898_v45, 4  ;;  %v954_v51 = vrot.slane %v898_v45, 6 }
 0x190   : > { %v1190_v47 = vrot.slane %v3347_v46, 1  ;;  %v1143_v48 = vshrl.u32 %v3347_v46, 16  ;;  %v1145_v49 = vshll.u32 %v3347_v46, 16 }
 0x191   : > { %1021 = vst [vmem:[#allocation1 + $0x22] ss:$4 sm:$0xff] %v952_v18 }
 0x192   : > { %v1022_v22 = vld.sshfl [vmem:[#allocation1] sm:$0xff pattern:$0x73625140]  ;;  %1202 = vrot.lane.b32.xlu2 %v1190_v47, %s3082_s23  ;;  %v1222_v52 = vrot.slane %v1143_v48, 1  ;;  %v1223_v53 = vrot.slane %v1145_v49, 2  ;;  %v1147_v54 = vrot.slane %v1145_v49, 1 }
 0x193   : > { %1024 = vst [vmem:[#allocation1] ss:$4 sm:$0xff] %v953_v50  ;;  %v1068_v57 = vpack.c.bf16 %v1022_v22, %v1022_v22  ;;  %v2829_v22 = vld [vmem:[%s3815_s2 + $0x38] sm:$0xff] }
 0x194   : > { %1025 = vst [vmem:[#allocation1 + $0x1] ss:$4 sm:$0xff] %v954_v51  ;;  %v1224_v55 = vor.u32 %v1223_v53, %v1222_v52  ;;  %v1148_v56 = vor.u32 %v1147_v54, %v1143_v48  ;;  %1652 = vmatpush.bf16.msra.mxu1 %v2829_v22  ;;  %v2828_v52 = vld [vmem:[%s3815_s2 + $0x30] sm:$0xff]  ;;  %2846 = vmatpush.bf16.msra.mxu2 %v2829_v22 }
 0x195   : > { %v1100_v1 = vunpack.c.l.b16 %v1068_v57 }
 0x196   : > { %v900_v58 = vpop.f32.mrf.mxu3  ;;  %1242 = vrot.lane.b32.xlu0 %v1224_v55, %s3081_s22  ;;  %1178 = vrot.lane.b32.xlu1 %v1148_v56, %s3080_s21  ;;  %v2827_v55 = vld [vmem:[%s3815_s2 + $0x28] sm:$0xff] }
 0x197   : > { %v955_v59 = vrot.slane %v900_v58, 2  ;;  %1026 = vst [vmem:[#allocation1 + $0x2] ss:$4 sm:$0xff] %v900_v58  ;;  %v956_v61 = vrot.slane %v900_v58, 4  ;;  %v957_v63 = vrot.slane %v900_v58, 6  ;;  %v2826_v58 = vld [vmem:[%s3815_s2 + $0x20] sm:$0xff] }
 0x198   : > { %v1023_v60 = vld.sshfl [vmem:[#allocation1 + $0x20] sm:$0xff pattern:$0x73625140]  ;;  %1653 = vmatpush.bf16.msra.mxu1 %v2828_v52  ;;  %2847 = vmatpush.bf16.msra.mxu2 %v2828_v52 }
 0x199   : > { %1027 = vst [vmem:[#allocation1 + $0x3] ss:$4 sm:$0xff] %v955_v59  ;;  %v1069_v0 = vpack.c.bf16 %v1023_v60, %v1023_v60 }
 0x19a   : > { %1028 = vst [vmem:[#allocation1 + $0x20] ss:$4 sm:$0xff] %v956_v61 }
 0x19b   : > { %1029 = vst [vmem:[#allocation1 + $0x21] ss:$4 sm:$0xff] %v957_v63  ;;  %v1101_v2 = vunpack.c.l.b16 %v1069_v0 }
 0x19c   : > { %1654 = vmatpush.bf16.msra.mxu1 %v2827_v55  ;;  %2848 = vmatpush.bf16.msra.mxu2 %v2827_v55 }
 0x19d   : > { %v3355_v3 = vpack.c.b16 %v1101_v2, %v1100_v1 }
 0x19e   : > { %v903_v4 = vpop.f32.mrf.mxu3 }
 0x19f   : > { %v958_v5 = vrot.slane %v903_v4, 2  ;;  %v959_v6 = vrot.slane %v903_v4, 4  ;;  %v960_v7 = vrot.slane %v903_v4, 6  ;;  %1030 = vst [vmem:[#allocation1 + $0x22] ss:$4 sm:$0xff] %v903_v4  ;;  %v1191_v8 = vrot.slane %v3355_v3, 1 }
 0x1a0   : > { %v1031_v9 = vld.sshfl [vmem:[#allocation1] sm:$0xff pattern:$0x73625140]  ;;  %v1150_v10 = vshrl.u32 %v3355_v3, 16  ;;  %v1152_v11 = vshll.u32 %v3355_v3, 16  ;;  %1655 = vmatpush.bf16.msra.mxu1 %v2826_v58  ;;  %2849 = vmatpush.bf16.msra.mxu2 %v2826_v58 }
 0x1a1   : > { %1033 = vst [vmem:[#allocation1] ss:$4 sm:$0xff] %v958_v5  ;;  %1204 = vrot.lane.b32.xlu2 %v1191_v8, %s3082_s23  ;;  %v1070_v17 = vpack.c.bf16 %v1031_v9, %v1031_v9 }
 0x1a2   : > { %1034 = vst [vmem:[#allocation1 + $0x1] ss:$4 sm:$0xff] %v959_v6  ;;  %v1225_v12 = vrot.slane %v1150_v10, 1  ;;  %v1226_v13 = vrot.slane %v1152_v11, 2  ;;  %v1154_v14 = vrot.slane %v1152_v11, 1 }
 0x1a3   : > { %1035 = vst [vmem:[#allocation1 + $0x2] ss:$4 sm:$0xff] %v960_v7  ;;  %v1102_v28 = vunpack.c.l.b16 %v1070_v17  ;;  %v2825_v7 = vld [vmem:[%s3815_s2 + $0x18] sm:$0xff] }
 0x1a4   : > { %v1227_v15 = vor.u32 %v1226_v13, %v1225_v12  ;;  %v1155_v16 = vor.u32 %v1154_v14, %v1150_v10  ;;  %1656 = vmatpush.bf16.msra.mxu1 %v2825_v7  ;;  %2850 = vmatpush.bf16.msra.mxu2 %v2825_v7  ;;  %v2823_v10 = vld [vmem:[%s3815_s2 + $0x8] sm:$0xff]  ;;  %v2822_v13 = vld [vmem:[%s3815_s2] sm:$0xff] }
 0x1a6   : > { %v1032_v21 = vld.sshfl [vmem:[#allocation1 + $0x20] sm:$0xff pattern:$0x73625140]  ;;  %v905_v23 = vpop.f32.mrf.mxu3  ;;  %1244 = vrot.lane.b32.xlu0 %v1227_v15, %s3081_s22  ;;  %1180 = vrot.lane.b32.xlu1 %v1155_v16, %s3080_s21 }
 0x1a7   : > { %v961_v24 = vrot.slane %v905_v23, 2  ;;  %v962_v25 = vrot.slane %v905_v23, 4  ;;  %v963_v26 = vrot.slane %v905_v23, 6  ;;  %1036 = vst [vmem:[#allocation1 + $0x3] ss:$4 sm:$0xff] %v905_v23  ;;  %v1071_v27 = vpack.c.bf16 %v1032_v21, %v1032_v21 }
 0x1a9   : > { %1037 = vst [vmem:[#allocation1 + $0x20] ss:$4 sm:$0xff] %v961_v24  ;;  %v1103_v29 = vunpack.c.l.b16 %v1071_v27 }
 0x1aa   : > { %1038 = vst [vmem:[#allocation1 + $0x21] ss:$4 sm:$0xff] %v962_v25 }
 0x1ab   : > { %1039 = vst [vmem:[#allocation1 + $0x22] ss:$4 sm:$0xff] %v963_v26  ;;  %v3363_v30 = vpack.c.b16 %v1103_v29, %v1102_v28 }
 0x1ad   : > { %v1192_v31 = vrot.slane %v3363_v30, 1  ;;  %v1159_v32 = vshll.u32 %v3363_v30, 16  ;;  %v1157_v34 = vshrl.u32 %v3363_v30, 16 }
 0x1ae   : > { %v1040_v33 = vld.sshfl [vmem:[#allocation1] sm:$0xff pattern:$0x73625140] }
 0x1af   : > { %1206 = vrot.lane.b32.xlu0 %v1192_v31, %s3082_s23  ;;  %v1161_v35 = vrot.slane %v1159_v32, 1  ;;  %v1072_v36 = vpack.c.bf16 %v1040_v33, %v1040_v33  ;;  %v1228_v53 = vrot.slane %v1157_v34, 1  ;;  %v1229_v54 = vrot.slane %v1159_v32, 2 }
 0x1b1   : > { %v1162_v37 = vor.u32 %v1161_v35, %v1157_v34  ;;  %v1104_v40 = vunpack.c.l.b16 %v1072_v36  ;;  %v1230_v56 = vor.u32 %v1229_v54, %v1228_v53 }
 0x1b2   : > { %v1041_v38 = vld.sshfl [vmem:[#allocation1 + $0x20] sm:$0xff pattern:$0x73625140] }
 0x1b3   : > { %1182 = vrot.lane.b32.xlu1 %v1162_v37, %s3080_s21  ;;  %v1073_v39 = vpack.c.bf16 %v1041_v38, %v1041_v38 }
 0x1b5   : > { %v1105_v42 = vunpack.c.l.b16 %v1073_v39 }
 0x1b7   : > { %v3370_v43 = vpack.c.b16 %v1105_v42, %v1104_v40 }
 0x1b9   : > { %v1193_v44 = vrot.slane %v3370_v43, 1  ;;  %v1164_v45 = vshrl.u32 %v3370_v43, 16  ;;  %v1166_v18 = vshll.u32 %v3370_v43, 16 }
 0x1bb   : > { %1208 = vrot.lane.b32.xlu1 %v1193_v44, %s3082_s23  ;;  %v1231_v47 = vrot.slane %v1164_v45, 1  ;;  %v1232_v48 = vrot.slane %v1166_v18, 2  ;;  %v1168_v49 = vrot.slane %v1166_v18, 1 }
 0x1bd   : > { %v1233_v50 = vor.u32 %v1232_v48, %v1231_v47  ;;  %v1169_v51 = vor.u32 %v1168_v49, %v1164_v45 }
 0x1bf   : > { %1248 = vrot.lane.b32.xlu0 %v1233_v50, %s3081_s22  ;;  %1184 = vrot.lane.b32.xlu2 %v1169_v51, %s3080_s21  ;;  %s2578_s21 = scalar_lea.hbm %s3820_s7, %s2811_s18 }
 0x1c0   : > { %s2582_s29 = sshll.u32 %s2578_s21, 4  ;;  %s2583_s29 = int_to_ptr.hbm [resolvable:$true] %s2582_s29 }
 0x1c1   : > { %v1197_v57 = vpop.permute.xlu2 %1196  ;;  %s3015_s9 = sshra.s32 %s2583_s29, 4  ;;  %s3016_s9 = int_to_ptr.hbm [resolvable:$true] %s3015_s9 }
 0x1c2   : > { %s3017_s14 = scalar_lea.hbm %s3016_s9, 8  ;;  %p3022_p3 = scmp.lt.s32.totalorder %s3016_s9, %s3820_s7 }
 0x1c3   : > { %p3018_p0 = scmp.ne.s32.totalorder %s3016_s9, %s3017_s14  ;;  %p3023_p4 = scmp.lt.s32.totalorder %s3021_s13, %s3017_s14 }
 0x1c5   : > { %p3019_p1 = pnand %p3018_p0, %p3161_p5  ;;  %p3024_p7 = por %p3023_p4, %p3022_p3 }
 0x1c7   : > { %1246 = vrot.lane.b32.xlu2 %v1230_v56, %s3081_s22  ;;  %s303_s22 = scalar_lea.vmem [#allocation7], %s2672_s17  ;;  %p3020_p2 = pneg %p3019_p1 }
 0x1c8   : > { %s2580_s23 = sshll.u32 %s303_s22, 4  ;;  %s2581_s23 = int_to_ptr.vmem [resolvable:$true] %s2580_s23 }
 0x1c9   : > { %v1195_v61 = vpop.permute.xlu2 %1194  ;;  %p3025_p8 = pnand %p3024_p7, %p3020_p2 }
 0x1ce   : > { %v1171_v59 = vpop.permute.xlu0 %1170 }
 0x1cf   : > { %v1252_v60 = vsel %vm1250_vm2, %v3315_v19, %v1171_v59  ;;  %v2824_v19 = vld [vmem:[%s3815_s2 + $0x10] sm:$0xff] }
 0x1d0   : > { %v1269_v0 = vsel %vm1267_vm8, %v1252_v60, %v1195_v61  ;;  %1657 = vmatpush.bf16.msra.mxu1 %v2824_v19  ;;  %2851 = vmatpush.bf16.msra.mxu2 %v2824_v19 }
 0x1d1   : > { %v1199_v29 = vpop.permute.xlu2 %1198 }
 0x1d4   : > { %1658 = vmatpush.bf16.msra.mxu1 %v2823_v10  ;;  %2852 = vmatpush.bf16.msra.mxu2 %v2823_v10 }
 0x1d6   : > { %v1235_v63 = vpop.permute.xlu0 %1234 }
 0x1d7   : > { %v1286_v1 = vsel %vm1284_vm9, %v1269_v0, %v1235_v63 }
 0x1d8   : > { %v1309_v2 = vrot.slane %v1286_v1, 1  ;;  %v1310_v4 = vrot.slane %v1286_v1, 2  ;;  %v1311_v5 = vrot.slane %v1286_v1, 3  ;;  %1498 = vst [vmem:[#allocation1] ss:$9 sm:$0xff] %v1286_v1  ;;  %v1312_v6 = vrot.slane %v1286_v1, 4  ;;  %1659 = vmatpush.bf16.msra.mxu1 %v2822_v13  ;;  %2853 = vmatpush.bf16.msra.mxu2 %v2822_v13 }
 0x1d9   : > { %v1313_v14 = vrot.slane %v1286_v1, 5 }
 0x1da   : > { %1501 = vst [vmem:[#allocation1 + $0x1] ss:$9 sm:$0xff] %v1309_v2 }
 0x1db   : > { %1504 = vst [vmem:[#allocation1 + $0x2] ss:$9 sm:$0xff] %v1310_v4 }
 0x1dc   : > { %1507 = vst [vmem:[#allocation1 + $0x3] ss:$9 sm:$0xff] %v1311_v5 }
 0x1dd   : > { %1510 = vst [vmem:[#allocation1 + $0x4] ss:$9 sm:$0xff] %v1312_v6 }
 0x1de   : > { %v1173_v8 = vpop.permute.xlu1 %1172 }
 0x1df   : > { %v1254_v9 = vsel %vm1250_vm2, %v3320_v41, %v1173_v8 }
 0x1e0   : > { %v1271_v11 = vsel %vm1267_vm8, %v1254_v9, %v1197_v57 }
 0x1e6   : > { %v1237_v12 = vpop.permute.xlu1 %1236 }
 0x1e7   : > { %v1288_v15 = vsel %vm1284_vm9, %v1271_v11, %v1237_v12 }
 0x1e8   : > { %v1314_v16 = vrot.slane %v1288_v15, 1  ;;  %v1361_v17 = vunpack.i.h.s16 %v1288_v15  ;;  %v2722_v21 = vpack.i.b16 %v1288_v15, %v1313_v14  ;;  %v1315_v41 = vrot.slane %v1288_v15, 2 }
 0x1e9   : > { %v1316_v26 = vrot.slane %v1288_v15, 3  ;;  %v1317_v27 = vrot.slane %v1288_v15, 4  ;;  %v1318_v37 = vrot.slane %v1288_v15, 5 }
 0x1ea   : > { %v1363_v23 = vunpack.i.h.s16 %v1314_v16  ;;  %v2723_v24 = vpack.i.b16 %v1314_v16, %v1361_v17  ;;  %1513 = vst [vmem:[#allocation1 + $0x5] ss:$9 sm:$0xff] %v2722_v21  ;;  %v1365_v32 = vunpack.i.h.s16 %v1315_v41 }
 0x1eb   : > { %v1367_v33 = vunpack.i.h.s16 %v1316_v26  ;;  %v1369_v34 = vunpack.i.h.s16 %v1317_v27 }
 0x1ec   : > { %v2724_v25 = vpack.i.b16 %v1315_v41, %v1363_v23  ;;  %1516 = vst [vmem:[#allocation1 + $0x6] ss:$9 sm:$0xff] %v2723_v24  ;;  %v1239_v35 = vpop.permute.xlu0 %1238  ;;  %v2725_v38 = vpack.i.b16 %v1316_v26, %v1365_v32 }
 0x1ed   : > { %v2726_v39 = vpack.i.b16 %v1317_v27, %v1367_v33  ;;  %v2727_v44 = vpack.i.b16 %v1318_v37, %v1369_v34 }
 0x1ee   : > { %1519 = vst [vmem:[#allocation1 + $0x7] ss:$9 sm:$0xff] %v2724_v25  ;;  %v1175_v28 = vpop.permute.xlu1 %1174 }
 0x1ef   : > { %v1256_v31 = vsel %vm1250_vm2, %v3330_v62, %v1175_v28  ;;  %v1201_v62 = vpop.permute.xlu2 %1200 }
 0x1f0   : > { %v1273_v36 = vsel %vm1267_vm8, %v1256_v31, %v1199_v29 }
 0x1f1   : > { %v1290_v42 = vsel %vm1284_vm9, %v1273_v36, %v1239_v35 }
 0x1f2   : > { %v1319_v45 = vrot.slane %v1290_v42, 1  ;;  %v1320_v47 = vrot.slane %v1290_v42, 2  ;;  %v1321_v49 = vrot.slane %v1290_v42, 3  ;;  %v1322_v22 = vrot.slane %v1290_v42, 4 }
 0x1f3   : > { %v1323_v60 = vrot.slane %v1290_v42, 5 }
 0x1f5   : > { %v1520_v40 = vld [vmem:[#allocation1] sm:$0xff] }
 0x1f6   : > { %1522 = vst [vmem:[#allocation1] ss:$9 sm:$0xff] %v2725_v38  ;;  %1660 = vmatmul.bf16.vlgmr.msra.gmra.mxu1 %v1520_v40 }
 0x1f7   : > { %1524 = vst [vmem:[#allocation1 + $0x1] ss:$9 sm:$0xff] %v2726_v39  ;;  %v1203_v8 = vpop.permute.xlu2 %1202 }
 0x1f8   : > { %1526 = vst [vmem:[#allocation1 + $0x2] ss:$9 sm:$0xff] %v2727_v44  ;;  %v1177_v18 = vpop.permute.xlu1 %1176  ;;  %v1241_v50 = vpop.permute.xlu0 %1240 }
 0x1f9   : > { %1528 = vst [vmem:[#allocation1 + $0x3] ss:$9 sm:$0xff] %v1290_v42  ;;  %v1258_v48 = vsel %vm1250_vm2, %v3339_v20, %v1177_v18 }
 0x1fa   : > { %1530 = vst [vmem:[#allocation1 + $0x4] ss:$9 sm:$0xff] %v1319_v45  ;;  %v1275_v51 = vsel %vm1267_vm8, %v1258_v48, %v1201_v62 }
 0x1fb   : > { %1532 = vst [vmem:[#allocation1 + $0x5] ss:$9 sm:$0xff] %v1320_v47  ;;  %v1292_v52 = vsel %vm1284_vm9, %v1275_v51, %v1241_v50 }
 0x1fc   : > { %1534 = vst [vmem:[#allocation1 + $0x6] ss:$9 sm:$0xff] %v1321_v49  ;;  %v1324_v53 = vrot.slane %v1292_v52, 1  ;;  %v1325_v54 = vrot.slane %v1292_v52, 2  ;;  %v1326_v55 = vrot.slane %v1292_v52, 3  ;;  %v1327_v56 = vrot.slane %v1292_v52, 4 }
 0x1fd   : > { %1536 = vst [vmem:[#allocation1 + $0x7] ss:$9 sm:$0xff] %v1322_v22  ;;  %v1383_v57 = vunpack.i.h.s16 %v1292_v52  ;;  %v2728_v0 = vpack.i.b16 %v1292_v52, %v1323_v60  ;;  %v1328_v4 = vrot.slane %v1292_v52, 5 }
 0x1fe   : > { %v1385_v58 = vunpack.i.h.s16 %v1324_v53  ;;  %v1387_v59 = vunpack.i.h.s16 %v1325_v54  ;;  %v1389_v20 = vunpack.i.h.s16 %v1326_v55  ;;  %v1391_v61 = vunpack.i.h.s16 %v1327_v56 }
 0x1ff   : > { %v2729_v63 = vpack.i.b16 %v1324_v53, %v1383_v57  ;;  %v1205_v17 = vpop.permute.xlu2 %1204 }
 0x200   : > { %v2730_v1 = vpack.i.b16 %v1325_v54, %v1385_v58  ;;  %v2731_v5 = vpack.i.b16 %v1326_v55, %v1387_v59  ;;  %v2732_v6 = vpack.i.b16 %v1327_v56, %v1389_v20  ;;  %v2733_v7 = vpack.i.b16 %v1328_v4, %v1391_v61 }
 0x204   : > { %v1537_v2 = vld [vmem:[#allocation1] sm:$0xff] }
 0x205   : > { %1539 = vst [vmem:[#allocation1] ss:$9 sm:$0xff] %v2728_v0 }
 0x206   : > { %1541 = vst [vmem:[#allocation1 + $0x1] ss:$9 sm:$0xff] %v2729_v63  ;;  %1665 = vmatmul.bf16.gmra.mxu1 %v1537_v2 }
 0x207   : > { %1543 = vst [vmem:[#allocation1 + $0x2] ss:$9 sm:$0xff] %v2730_v1 }
 0x208   : > { %1545 = vst [vmem:[#allocation1 + $0x3] ss:$9 sm:$0xff] %v2731_v5  ;;  %v1179_v19 = vpop.permute.xlu1 %1178  ;;  %v1243_v10 = vpop.permute.xlu0 %1242 }
 0x209   : > { %1547 = vst [vmem:[#allocation1 + $0x4] ss:$9 sm:$0xff] %v2732_v6  ;;  %v1260_v9 = vsel %vm1250_vm2, %v3347_v46, %v1179_v19 }
 0x20a   : > { %1549 = vst [vmem:[#allocation1 + $0x5] ss:$9 sm:$0xff] %v2733_v7  ;;  %v1277_v11 = vsel %vm1267_vm8, %v1260_v9, %v1203_v8 }
 0x20b   : > { %v1294_v12 = vsel %vm1284_vm9, %v1277_v11, %v1243_v10 }
 0x20c   : > { %v1329_v13 = vrot.slane %v1294_v12, 1  ;;  %1551 = vst [vmem:[#allocation1 + $0x6] ss:$9 sm:$0xff] %v1294_v12  ;;  %v1330_v14 = vrot.slane %v1294_v12, 2  ;;  %v1331_v15 = vrot.slane %v1294_v12, 3  ;;  %v1332_v21 = vrot.slane %v1294_v12, 4 }
 0x20d   : > { %v1333_v25 = vrot.slane %v1294_v12, 5 }
 0x20e   : > { %1553 = vst [vmem:[#allocation1 + $0x7] ss:$9 sm:$0xff] %v1329_v13  ;;  %v3438_v13 = vld [vmem:[%s3816_s3] ss:$0 sm:$0xff] }
 0x215   : > { %v1554_v16 = vld [vmem:[#allocation1] sm:$0xff] }
 0x216   : > { %1556 = vst [vmem:[#allocation1] ss:$9 sm:$0xff] %v1330_v14  ;;  %1670 = vmatmul.bf16.gmra.mxu1 %v1554_v16  ;;  %v3440_v14 = vld [vmem:[#allocation2] sm:$0xff]  ;;  %v3446_v16 = vrot.slane %v3438_v13, 2 }
 0x217   : > { %1558 = vst [vmem:[#allocation1 + $0x1] ss:$9 sm:$0xff] %v1331_v15  ;;  %v3443_v15 = vrot.slane %v3438_v13, 1 }
 0x218   : > { %1560 = vst [vmem:[#allocation1 + $0x2] ss:$9 sm:$0xff] %v1332_v21  ;;  %v1181_v41 = vpop.permute.xlu1 %1180  ;;  %v1245_v23 = vpop.permute.xlu0 %1244  ;;  %v3452_v21 = vrot.slane %v3438_v13, 4 }
 0x219   : > { %v1262_v46 = vsel %vm1250_vm2, %v3355_v3, %v1181_v41  ;;  %v1185_v33 = vpop.permute.xlu2 %1184  ;;  %v3455_v41 = vrot.slane %v3438_v13, 5 }
 0x21a   : > { %v1279_v24 = vsel %vm1267_vm8, %v1262_v46, %v1205_v17  ;;  %v1266_v54 = vsel %vm1250_vm2, %v3370_v43, %v1185_v33  ;;  %v3449_v17 = vrot.slane %v3438_v13, 3  ;;  %v3458_v46 = vrot.slane %v3438_v13, 6 }
 0x21b   : > { %v1296_v26 = vsel %vm1284_vm9, %v1279_v24, %v1245_v23  ;;  %v3461_v23 = vrot.slane %v3438_v13, 7  ;;  %v3464_v24 = vrot.slane %v3440_v14, 1 }
 0x21c   : > { %v1334_v27 = vrot.slane %v1296_v26, 1  ;;  %v1335_v28 = vrot.slane %v1296_v26, 2  ;;  %v1336_v29 = vrot.slane %v1296_v26, 3  ;;  %v1405_v31 = vunpack.i.h.s16 %v1296_v26 }
 0x21d   : > { %v2734_v32 = vpack.i.b16 %v1296_v26, %v1333_v25  ;;  %v1337_v34 = vrot.slane %v1296_v26, 4  ;;  %v1338_v47 = vrot.slane %v1296_v26, 5  ;;  %v3467_v25 = vrot.slane %v3440_v14, 2 }
 0x21e   : > { %v1407_v35 = vunpack.i.h.s16 %v1334_v27  ;;  %v1409_v36 = vunpack.i.h.s16 %v1335_v28  ;;  %v1411_v37 = vunpack.i.h.s16 %v1336_v29  ;;  %v2735_v38 = vpack.i.b16 %v1334_v27, %v1405_v31 }
 0x21f   : > { %1562 = vst [vmem:[#allocation1 + $0x3] ss:$9 sm:$0xff] %v2734_v32  ;;  %v1413_v44 = vunpack.i.h.s16 %v1337_v34  ;;  %v3470_v27 = vrot.slane %v3440_v14, 3  ;;  %v3479_v31 = vrot.slane %v3440_v14, 6 }
 0x220   : > { %v2736_v39 = vpack.i.b16 %v1335_v28, %v1407_v35  ;;  %v2737_v3 = vpack.i.b16 %v1336_v29, %v1409_v36  ;;  %v2738_v40 = vpack.i.b16 %v1337_v34, %v1411_v37  ;;  %1564 = vst [vmem:[#allocation1 + $0x4] ss:$9 sm:$0xff] %v2735_v38  ;;  %v3473_v28 = vrot.slane %v3440_v14, 4 }
 0x221   : > { %v1207_v45 = vpop.permute.xlu0 %1206  ;;  %v1247_v48 = vpop.permute.xlu2 %1246  ;;  %v2739_v50 = vpack.i.b16 %v1338_v47, %v1413_v44  ;;  %v3476_v29 = vrot.slane %v3440_v14, 5 }
 0x222   : > { %1566 = vst [vmem:[#allocation1 + $0x5] ss:$9 sm:$0xff] %v2736_v39 }
 0x223   : > { %1568 = vst [vmem:[#allocation1 + $0x6] ss:$9 sm:$0xff] %v2737_v3 }
 0x224   : > { %1570 = vst [vmem:[#allocation1 + $0x7] ss:$9 sm:$0xff] %v2738_v40 }
 0x225   : > { %v1183_v42 = vpop.permute.xlu1 %1182 }
 0x226   : > { %v1264_v18 = vsel %vm1250_vm2, %v3363_v30, %v1183_v42 }
 0x227   : > { %v1281_v62 = vsel %vm1267_vm8, %v1264_v18, %v1207_v45 }
 0x228   : > { %v1298_v49 = vsel %vm1284_vm9, %v1281_v62, %v1247_v48 }
 0x229   : > { %v1339_v22 = vrot.slane %v1298_v49, 1  ;;  %v1340_v52 = vrot.slane %v1298_v49, 2  ;;  %v1341_v55 = vrot.slane %v1298_v49, 3  ;;  %v1342_v30 = vrot.slane %v1298_v49, 4 }
 0x22a   : > { %v1343_v58 = vrot.slane %v1298_v49, 5 }
 0x22b   : > { %v1571_v51 = vld [vmem:[#allocation1] sm:$0xff] }
 0x22c   : > { %1573 = vst [vmem:[#allocation1] ss:$9 sm:$0xff] %v2739_v50  ;;  %1675 = vmatmul.bf16.gmra.mxu1 %v1571_v51 }
 0x22d   : > { %1575 = vst [vmem:[#allocation1 + $0x1] ss:$9 sm:$0xff] %v1298_v49  ;;  %v1209_v53 = vpop.permute.xlu1 %1208 }
 0x22e   : > { %1577 = vst [vmem:[#allocation1 + $0x2] ss:$9 sm:$0xff] %v1339_v22  ;;  %v1283_v56 = vsel %vm1267_vm8, %v1266_v54, %v1209_v53  ;;  %v3490_v53 = vrot.slane %v3440_v14, 7 }
 0x22f   : > { %1579 = vst [vmem:[#allocation1 + $0x3] ss:$9 sm:$0xff] %v1340_v52 }
 0x230   : > { %1581 = vst [vmem:[#allocation1 + $0x4] ss:$9 sm:$0xff] %v1341_v55 }
 0x231   : > { %1583 = vst [vmem:[#allocation1 + $0x5] ss:$9 sm:$0xff] %v1342_v30  ;;  %v1249_v57 = vpop.permute.xlu0 %1248 }
 0x232   : > { %v1300_v59 = vsel %vm1284_vm9, %v1283_v56, %v1249_v57 }
 0x233   : > { %v1344_v60 = vrot.slane %v1300_v59, 1  ;;  %v1427_v20 = vunpack.i.h.s16 %v1300_v59  ;;  %v2740_v61 = vpack.i.b16 %v1300_v59, %v1343_v58  ;;  %v1345_v0 = vrot.slane %v1300_v59, 2 }
 0x234   : > { %v1346_v1 = vrot.slane %v1300_v59, 3  ;;  %v1347_v43 = vrot.slane %v1300_v59, 4  ;;  %v1348_v19 = vrot.slane %v1300_v59, 5 }
 0x235   : > { %v2741_v63 = vpack.i.b16 %v1344_v60, %v1427_v20  ;;  %1585 = vst [vmem:[#allocation1 + $0x6] ss:$9 sm:$0xff] %v2740_v61  ;;  %v1429_v2 = vunpack.i.h.s16 %v1344_v60  ;;  %v1431_v4 = vunpack.i.h.s16 %v1345_v0 }
 0x236   : > { %v1433_v5 = vunpack.i.h.s16 %v1346_v1  ;;  %v1435_v6 = vunpack.i.h.s16 %v1347_v43 }
 0x237   : > { %1587 = vst [vmem:[#allocation1 + $0x7] ss:$9 sm:$0xff] %v2741_v63  ;;  %v2742_v7 = vpack.i.b16 %v1345_v0, %v1429_v2  ;;  %v2743_v8 = vpack.i.b16 %v1346_v1, %v1431_v4  ;;  %v3503_v4 = vld [vmem:[#allocation2 + $0x8] sm:$0x7] }
 0x238   : > { %v2744_v10 = vpack.i.b16 %v1347_v43, %v1433_v5  ;;  %v2745_v11 = vpack.i.b16 %v1348_v19, %v1435_v6  ;;  %v3506_v6 = vrot.slane %v3503_v4, 1 }
 0x23e   : > { %v1588_v9 = vld [vmem:[#allocation1] sm:$0xff] }
 0x23f   : > { %1590 = vst [vmem:[#allocation1] ss:$9 sm:$0xff] %v2742_v7  ;;  %1680 = vmatmul.bf16.vlgmr.msra.gmra.mxu2 %v1588_v9 }
 0x240   : > { %1592 = vst [vmem:[#allocation1 + $0x1] ss:$9 sm:$0xff] %v2743_v8  ;;  %v3509_v8 = vrot.slane %v3503_v4, 2 }
 0x241   : > { %1594 = vst [vmem:[#allocation1 + $0x2] ss:$9 sm:$0xff] %v2744_v10 }
 0x242   : > { %1596 = vst [vmem:[#allocation1 + $0x3] ss:$9 sm:$0xff] %v2745_v11 }
 0x249   : > { %v1597_v12 = vld [vmem:[#allocation1] sm:$0xff] }
 0x24f   : > { %1685 = vmatmul.bf16.gmra.mxu2 %v1597_v12 }
 0x273   : > { %v1661_v26 = vpop.f32.mrf.mxu1 }
 0x274   : > { %v1701_v32 = vrot.slane %v1661_v26, 1  ;;  %v1702_v33 = vrot.slane %v1661_v26, 2  ;;  %v1703_v34 = vrot.slane %v1661_v26, 3  ;;  %v1704_v35 = vrot.slane %v1661_v26, 4 }
 0x275   : > { %v1705_v36 = vrot.slane %v1661_v26, 5  ;;  %v1706_v37 = vrot.slane %v1661_v26, 6  ;;  %v1707_v38 = vrot.slane %v1661_v26, 7  ;;  %v1873_v39 = vadd.f32 %v3438_v13, %v1661_v26 }
 0x276   : > { %v1874_v3 = vadd.f32 %v3443_v15, %v1701_v32  ;;  %v1875_v40 = vadd.f32 %v3446_v16, %v1702_v33  ;;  %v1876_v42 = vadd.f32 %v3449_v17, %v1703_v34  ;;  %v1877_v44 = vadd.f32 %v3452_v21, %v1704_v35 }
 0x277   : > { %v1878_v45 = vadd.f32 %v3455_v41, %v1705_v36  ;;  %v1879_v18 = vadd.f32 %v3458_v46, %v1706_v37  ;;  %v1880_v62 = vadd.f32 %v3461_v23, %v1707_v38  ;;  %v1961_v47 = vmax.f32 %v1873_v39, 0.0 }
 0x278   : > { %v1962_v48 = vmax.f32 %v1874_v3, 0.0  ;;  %v1963_v49 = vmax.f32 %v1875_v40, 0.0  ;;  %v1964_v50 = vmax.f32 %v1876_v42, 0.0  ;;  %v1965_v51 = vmax.f32 %v1877_v44, 0.0 }
 0x279   : > { %v1966_v22 = vmax.f32 %v1878_v45, 0.0  ;;  %v1967_v52 = vmax.f32 %v1879_v18, 0.0  ;;  %v2071_v54 = vmul.f32 %v3440_v14, %v1961_v47  ;;  %v1968_v55 = vmax.f32 %v1880_v62, 0.0 }
 0x27a   : > { %v2072_v30 = vmul.f32 %v3464_v24, %v1962_v48  ;;  %v2073_v56 = vmul.f32 %v3467_v25, %v1963_v49  ;;  %v2074_v57 = vmul.f32 %v3470_v27, %v1964_v50  ;;  %v2075_v58 = vmul.f32 %v3473_v28, %v1965_v51 }
 0x27b   : > { %2247 = vst [vmem:[#allocation1] ss:$9 sm:$0xff] %v2071_v54  ;;  %v1663_v59 = vpop.f32.mrf.mxu1  ;;  %v2076_v60 = vmul.f32 %v3476_v29, %v1966_v22  ;;  %v2077_v63 = vmul.f32 %v3479_v31, %v1967_v52  ;;  %v2078_v0 = vmul.f32 %v3490_v53, %v1968_v55 }
 0x27c   : > { %2249 = vst [vmem:[#allocation1 + $0x1] ss:$9 sm:$0xff] %v2072_v30  ;;  %v1708_v20 = vrot.slane %v1663_v59, 1  ;;  %v1709_v61 = vrot.slane %v1663_v59, 2  ;;  %v1881_v43 = vadd.f32 %v3438_v13, %v1663_v59  ;;  %v1710_v9 = vrot.slane %v1663_v59, 3 }
 0x27d   : > { %2251 = vst [vmem:[#allocation1 + $0x2] ss:$9 sm:$0xff] %v2073_v56  ;;  %v1711_v10 = vrot.slane %v1663_v59, 4  ;;  %v1712_v26 = vrot.slane %v1663_v59, 5  ;;  %v1713_v35 = vrot.slane %v1663_v59, 6  ;;  %v1714_v36 = vrot.slane %v1663_v59, 7 }
 0x27e   : > { %2253 = vst [vmem:[#allocation1 + $0x3] ss:$9 sm:$0xff] %v2074_v57  ;;  %v1882_v1 = vadd.f32 %v3443_v15, %v1708_v20  ;;  %v1883_v2 = vadd.f32 %v3446_v16, %v1709_v61  ;;  %v1969_v7 = vmax.f32 %v1881_v43, 0.0  ;;  %v1884_v37 = vadd.f32 %v3438_v13, %v1710_v9 }
 0x27f   : > { %2255 = vst [vmem:[#allocation1 + $0x4] ss:$9 sm:$0xff] %v2075_v58  ;;  %v1885_v39 = vadd.f32 %v3443_v15, %v1711_v10  ;;  %v1886_v40 = vadd.f32 %v3446_v16, %v1712_v26  ;;  %v1887_v42 = vadd.f32 %v3449_v17, %v1713_v35  ;;  %v1888_v44 = vadd.f32 %v3452_v21, %v1714_v36 }
 0x280   : > { %2257 = vst [vmem:[#allocation1 + $0x5] ss:$9 sm:$0xff] %v2076_v60  ;;  %v1970_v5 = vmax.f32 %v1882_v1, 0.0  ;;  %v1971_v19 = vmax.f32 %v1883_v2, 0.0  ;;  %v2079_v32 = vmul.f32 %v3503_v4, %v1969_v7  ;;  %v1972_v45 = vmax.f32 %v1884_v37, 0.0 }
 0x281   : > { %2259 = vst [vmem:[#allocation1 + $0x6] ss:$9 sm:$0xff] %v2077_v63  ;;  %v1973_v62 = vmax.f32 %v1885_v39, 0.0  ;;  %v1974_v49 = vmax.f32 %v1886_v40, 0.0  ;;  %v1975_v50 = vmax.f32 %v1887_v42, 0.0  ;;  %v1976_v51 = vmax.f32 %v1888_v44, 0.0 }
 0x282   : > { %2261 = vst [vmem:[#allocation1 + $0x7] ss:$9 sm:$0xff] %v2078_v0  ;;  %v2080_v11 = vmul.f32 %v3506_v6, %v1970_v5  ;;  %v2081_v33 = vmul.f32 %v3509_v8, %v1971_v19  ;;  %v2082_v22 = vmul.f32 %v3440_v14, %v1972_v45 }
 0x283   : > { %v3512_v12 = vpop.f32.mrf.mxu1  ;;  %v2083_v54 = vmul.f32 %v3464_v24, %v1973_v62  ;;  %v2084_v57 = vmul.f32 %v3467_v25, %v1974_v49  ;;  %v2085_v58 = vmul.f32 %v3470_v27, %v1975_v50  ;;  %v2086_v60 = vmul.f32 %v3473_v28, %v1976_v51 }
 0x284   : > { %v1715_v38 = vrot.slane %v3512_v12, 1  ;;  %v1716_v3 = vrot.slane %v3512_v12, 2  ;;  %v1889_v47 = vadd.f32 %v3455_v41, %v3512_v12  ;;  %v1717_v59 = vrot.slane %v3512_v12, 3 }
 0x285   : > { %v1718_v20 = vrot.slane %v3512_v12, 4  ;;  %v1719_v63 = vrot.slane %v3512_v12, 5  ;;  %v1720_v9 = vrot.slane %v3512_v12, 6  ;;  %v1721_v26 = vrot.slane %v3512_v12, 7 }
 0x286   : > { %v1890_v18 = vadd.f32 %v3458_v46, %v1715_v38  ;;  %v1891_v48 = vadd.f32 %v3461_v23, %v1716_v3  ;;  %v1977_v30 = vmax.f32 %v1889_v47, 0.0  ;;  %v1892_v43 = vadd.f32 %v3438_v13, %v1717_v59 }
 0x287   : > { %v1893_v2 = vadd.f32 %v3443_v15, %v1718_v20  ;;  %v1894_v5 = vadd.f32 %v3446_v16, %v1719_v63  ;;  %v1895_v37 = vadd.f32 %v3438_v13, %v1720_v9  ;;  %v1896_v3 = vadd.f32 %v3443_v15, %v1721_v26 }
 0x288   : > { %v1978_v52 = vmax.f32 %v1890_v18, 0.0  ;;  %v1979_v56 = vmax.f32 %v1891_v48, 0.0  ;;  %v2087_v0 = vmul.f32 %v3476_v29, %v1977_v30  ;;  %v1980_v7 = vmax.f32 %v1892_v43, 0.0 }
 0x289   : > { %v3516_v34 = vld [vmem:[#allocation1] sm:$0xff]  ;;  %v1981_v19 = vmax.f32 %v1893_v2, 0.0  ;;  %v1982_v10 = vmax.f32 %v1894_v5, 0.0  ;;  %v1983_v18 = vmax.f32 %v1895_v37, 0.0  ;;  %v1984_v47 = vmax.f32 %v1896_v3, 0.0 }
 0x28a   : > { %2263 = vst [vmem:[#allocation1] ss:$9 sm:$0xff] %v2079_v32  ;;  %v2088_v61 = vmul.f32 %v3479_v31, %v1978_v52  ;;  %v2089_v1 = vmul.f32 %v3490_v53, %v1979_v56  ;;  %v2090_v32 = vmul.f32 %v3503_v4, %v1980_v7 }
 0x28b   : > { %2264 = vst [vmem:[#allocation1 + $0x1] ss:$9 sm:$0xff] %v2080_v11  ;;  %v1668_v11 = vpop.f32.mrf.mxu1  ;;  %v2092_v38 = vmul.f32 %v3509_v8, %v1982_v10  ;;  %v2093_v52 = vmul.f32 %v3440_v14, %v1983_v18  ;;  %v2094_v30 = vmul.f32 %v3464_v24, %v1984_v47 }
 0x28c   : > { %2265 = vst [vmem:[#allocation1 + $0x2] ss:$9 sm:$0xff] %v2081_v33  ;;  %v2091_v33 = vmul.f32 %v3506_v6, %v1981_v19  ;;  %v1722_v36 = vrot.slane %v1668_v11, 1  ;;  %v1723_v39 = vrot.slane %v1668_v11, 2  ;;  %v1724_v40 = vrot.slane %v1668_v11, 3 }
 0x28d   : > { %v1725_v42 = vrot.slane %v1668_v11, 4  ;;  %v1897_v12 = vadd.f32 %v3446_v16, %v1668_v11  ;;  %v1726_v44 = vrot.slane %v1668_v11, 5  ;;  %v1728_v63 = vrot.slane %v1668_v11, 7 }
 0x28e   : > { %v1898_v45 = vadd.f32 %v3449_v17, %v1722_v36  ;;  %v1899_v62 = vadd.f32 %v3452_v21, %v1723_v39  ;;  %v1900_v48 = vadd.f32 %v3455_v41, %v1724_v40  ;;  %v2837_v40 = vld [vmem:[#allocation5 + $0x38] sm:$0xff] }
 0x28f   : > { %v1901_v49 = vadd.f32 %v3458_v46, %v1725_v42  ;;  %v1985_v50 = vmax.f32 %v1897_v12, 0.0  ;;  %v1902_v51 = vadd.f32 %v3461_v23, %v1726_v44  ;;  %v1904_v19 = vadd.f32 %v3443_v15, %v1728_v63  ;;  %2544 = vmatpush.bf16.msrb.mxu2 %v2837_v40 }
 0x291   : > { %v2095_v59 = vmul.f32 %v3467_v25, %v1985_v50  ;;  %v1990_v20 = vmax.f32 %v1902_v51, 0.0 }
 0x293   : > { %v3531_v55 = vld [vmem:[#allocation1] sm:$0xff]  ;;  %v1671_v2 = vpop.f32.mrf.mxu1  ;;  %v2100_v7 = vmul.f32 %v3490_v53, %v1990_v20 }
 0x294   : > { %2267 = vst [vmem:[#allocation1] ss:$9 sm:$0xff] %v2082_v22  ;;  %v1986_v22 = vmax.f32 %v1898_v45, 0.0  ;;  %v1905_v9 = vadd.f32 %v3446_v16, %v1671_v2  ;;  %v1733_v26 = vrot.slane %v1671_v2, 5  ;;  %v1730_v37 = vrot.slane %v1671_v2, 2 }
 0x295   : > { %2268 = vst [vmem:[#allocation1 + $0x1] ss:$9 sm:$0xff] %v2083_v54  ;;  %v1987_v54 = vmax.f32 %v1899_v62, 0.0  ;;  %v1731_v3 = vrot.slane %v1671_v2, 3  ;;  %v1732_v42 = vrot.slane %v1671_v2, 4  ;;  %v1734_v45 = vrot.slane %v1671_v2, 6 }
 0x296   : > { %2269 = vst [vmem:[#allocation1 + $0x2] ss:$9 sm:$0xff] %v2084_v57  ;;  %v1988_v57 = vmax.f32 %v1900_v48, 0.0  ;;  %v1910_v12 = vadd.f32 %v3452_v21, %v1733_v26  ;;  %v2836_v62 = vld [vmem:[#allocation5 + $0x30] sm:$0xff]  ;;  %v1735_v47 = vrot.slane %v1671_v2, 7  ;;  %v1907_v48 = vadd.f32 %v3443_v15, %v1730_v37 }
 0x297   : > { %2270 = vst [vmem:[#allocation1 + $0x3] ss:$9 sm:$0xff] %v2085_v58  ;;  %v1989_v58 = vmax.f32 %v1901_v49, 0.0  ;;  %v1908_v49 = vadd.f32 %v3446_v16, %v1731_v3  ;;  %v1909_v50 = vadd.f32 %v3449_v17, %v1732_v42  ;;  %2545 = vmatpush.bf16.msrb.mxu2 %v2836_v62 }
 0x298   : > { %2271 = vst [vmem:[#allocation1 + $0x4] ss:$9 sm:$0xff] %v2086_v60  ;;  %v1727_v60 = vrot.slane %v1668_v11, 6  ;;  %v1992_v11 = vmax.f32 %v1904_v19, 0.0  ;;  %v1998_v51 = vmax.f32 %v1910_v12, 0.0 }
 0x299   : > { %2272 = vst [vmem:[#allocation1 + $0x5] ss:$9 sm:$0xff] %v2087_v0  ;;  %v2097_v0 = vmul.f32 %v3473_v28, %v1987_v54  ;;  %v2099_v43 = vmul.f32 %v3479_v31, %v1989_v58  ;;  %v1995_v58 = vmax.f32 %v1907_v48, 0.0  ;;  %v2831_v48 = vld [vmem:[#allocation5 + $0x8] sm:$0xff] }
 0x29a   : > { %2273 = vst [vmem:[#allocation1 + $0x6] ss:$9 sm:$0xff] %v2088_v61  ;;  %v2096_v61 = vmul.f32 %v3470_v27, %v1986_v22  ;;  %v1903_v5 = vadd.f32 %v3438_v13, %v1727_v60  ;;  %v2108_v63 = vmul.f32 %v3473_v28, %v1998_v51 }
 0x29b   : > { %2274 = vst [vmem:[#allocation1 + $0x7] ss:$9 sm:$0xff] %v2089_v1  ;;  %v2098_v1 = vmul.f32 %v3476_v29, %v1988_v57  ;;  %v3583_v22 = vpop.f32.mrf.mxu1  ;;  %v1912_v57 = vadd.f32 %v3458_v46, %v1735_v47 }
 0x29c   : > { %v1991_v10 = vmax.f32 %v1903_v5, 0.0  ;;  %v1913_v60 = vadd.f32 %v3461_v23, %v3583_v22  ;;  %v1737_v26 = vrot.slane %v3583_v22, 2  ;;  %v1739_v62 = vrot.slane %v3583_v22, 4 }
 0x29d   : > { %v2000_v5 = vmax.f32 %v1912_v57, 0.0 }
 0x29e   : > { %v2101_v36 = vmul.f32 %v3503_v4, %v1991_v10  ;;  %v2001_v10 = vmax.f32 %v1913_v60, 0.0  ;;  %v1915_v42 = vadd.f32 %v3443_v15, %v1737_v26 }
 0x29f   : > { %v2110_v37 = vmul.f32 %v3479_v31, %v2000_v5 }
 0x2a0   : > { %v2111_v3 = vmul.f32 %v3490_v53, %v2001_v10 }
 0x2a2   : > { %v3549_v35 = vld [vmem:[#allocation1] sm:$0xff] }
 0x2a3   : > { %2276 = vst [vmem:[#allocation1] ss:$9 sm:$0xff] %v2090_v32  ;;  %v1993_v32 = vmax.f32 %v1905_v9, 0.0  ;;  %v1736_v9 = vrot.slane %v3583_v22, 1 }
 0x2a4   : > { %2277 = vst [vmem:[#allocation1 + $0x1] ss:$9 sm:$0xff] %v2091_v33  ;;  %v1729_v33 = vrot.slane %v1671_v2, 1  ;;  %v2834_v2 = vld [vmem:[#allocation5 + $0x20] sm:$0xff] }
 0x2a5   : > { %2278 = vst [vmem:[#allocation1 + $0x2] ss:$9 sm:$0xff] %v2092_v38  ;;  %v2102_v38 = vmul.f32 %v3506_v6, %v1992_v11  ;;  %v2103_v44 = vmul.f32 %v3509_v8, %v1993_v32 }
 0x2a6   : > { %v1906_v18 = vadd.f32 %v3438_v13, %v1729_v33  ;;  %v1738_v33 = vrot.slane %v3583_v22, 3 }
 0x2a8   : > { %v1994_v54 = vmax.f32 %v1906_v18, 0.0  ;;  %v1916_v12 = vadd.f32 %v3446_v16, %v1738_v33  ;;  %v2003_v18 = vmax.f32 %v1915_v42, 0.0 }
 0x2aa   : > { %v2004_v47 = vmax.f32 %v1916_v12, 0.0  ;;  %v2113_v57 = vmul.f32 %v3506_v6, %v2003_v18 }
 0x2ac   : > { %v3562_v56 = vld [vmem:[#allocation1] sm:$0xff]  ;;  %v2114_v60 = vmul.f32 %v3509_v8, %v2004_v47 }
 0x2ad   : > { %2280 = vst [vmem:[#allocation1] ss:$9 sm:$0xff] %v2093_v52  ;;  %v1911_v52 = vadd.f32 %v3455_v41, %v1734_v45 }
 0x2ae   : > { %2281 = vst [vmem:[#allocation1 + $0x1] ss:$9 sm:$0xff] %v2094_v30  ;;  %v2835_v30 = vld [vmem:[#allocation5 + $0x28] sm:$0xff] }
 0x2af   : > { %2282 = vst [vmem:[#allocation1 + $0x2] ss:$9 sm:$0xff] %v2095_v59  ;;  %v1996_v59 = vmax.f32 %v1908_v49, 0.0  ;;  %2546 = vmatpush.bf16.msrb.mxu2 %v2835_v30  ;;  %v1740_v49 = vrot.slane %v3583_v22, 5  ;;  %v1742_v30 = vrot.slane %v3583_v22, 7 }
 0x2b0   : > { %2283 = vst [vmem:[#allocation1 + $0x3] ss:$9 sm:$0xff] %v2096_v61  ;;  %v1997_v61 = vmax.f32 %v1909_v50, 0.0  ;;  %v1741_v50 = vrot.slane %v3583_v22, 6 }
 0x2b1   : > { %2284 = vst [vmem:[#allocation1 + $0x4] ss:$9 sm:$0xff] %v2097_v0  ;;  %v1999_v0 = vmax.f32 %v1911_v52, 0.0  ;;  %v2106_v19 = vmul.f32 %v3467_v25, %v1996_v59  ;;  %v3613_v52 = vpop.f32.mrf.mxu1  ;;  %v1917_v59 = vadd.f32 %v3438_v13, %v1739_v62 }
 0x2b2   : > { %2285 = vst [vmem:[#allocation1 + $0x5] ss:$9 sm:$0xff] %v2098_v1  ;;  %v2104_v1 = vmul.f32 %v3440_v14, %v1994_v54  ;;  %v2107_v11 = vmul.f32 %v3470_v27, %v1997_v61  ;;  %v2830_v61 = vld [vmem:[#allocation5] sm:$0xff]  ;;  %v1744_v22 = vrot.slane %v3613_v52, 2  ;;  %v1745_v5 = vrot.slane %v3613_v52, 3 }
 0x2b3   : > { %2286 = vst [vmem:[#allocation1 + $0x6] ss:$9 sm:$0xff] %v2099_v43  ;;  %v2109_v32 = vmul.f32 %v3476_v29, %v1999_v0  ;;  %2547 = vmatpush.bf16.msrb.mxu2 %v2834_v2  ;;  %v1743_v0 = vrot.slane %v3613_v52, 1  ;;  %v1920_v2 = vadd.f32 %v3449_v17, %v1742_v30  ;;  %v1746_v62 = vrot.slane %v3613_v52, 4 }
 0x2b4   : > { %2287 = vst [vmem:[#allocation1 + $0x7] ss:$9 sm:$0xff] %v2100_v7  ;;  %v2105_v7 = vmul.f32 %v3464_v24, %v1995_v58  ;;  %v1923_v26 = vadd.f32 %v3458_v46, %v1744_v22  ;;  %v1749_v22 = vrot.slane %v3613_v52, 7 }
 0x2b5   : > { %v1922_v10 = vadd.f32 %v3455_v41, %v1743_v0  ;;  %v2008_v33 = vmax.f32 %v1920_v2, 0.0 }
 0x2b7   : > { %v2010_v42 = vmax.f32 %v1922_v10, 0.0  ;;  %v2118_v18 = vmul.f32 %v3470_v27, %v2008_v33 }
 0x2bb   : > { %v3575_v39 = vld [vmem:[#allocation1] sm:$0xff] }
 0x2bc   : > { %2289 = vst [vmem:[#allocation1] ss:$9 sm:$0xff] %v2101_v36  ;;  %v2833_v36 = vld [vmem:[#allocation5 + $0x18] sm:$0xff] }
 0x2bd   : > { %2290 = vst [vmem:[#allocation1 + $0x1] ss:$9 sm:$0xff] %v2102_v38  ;;  %v1914_v38 = vadd.f32 %v3438_v13, %v1736_v9  ;;  %2548 = vmatpush.bf16.msrb.mxu2 %v2833_v36  ;;  %v1924_v36 = vadd.f32 %v3461_v23, %v1745_v5 }
 0x2be   : > { %2291 = vst [vmem:[#allocation1 + $0x2] ss:$9 sm:$0xff] %v2103_v44  ;;  %v2832_v44 = vld [vmem:[#allocation5 + $0x10] sm:$0xff] }
 0x2bf   : > { %v2002_v45 = vmax.f32 %v1914_v38, 0.0  ;;  %v2012_v47 = vmax.f32 %v1924_v36, 0.0 }
 0x2c1   : > { %2549 = vmatpush.bf16.msrb.mxu2 %v2832_v44  ;;  %v2112_v51 = vmul.f32 %v3503_v4, %v2002_v45  ;;  %v2011_v45 = vmax.f32 %v1923_v26, 0.0 }
 0x2c2   : > { %v3589_v20 = vpop.f32.mrf.mxu2 }
 0x2c3   : > { %v2121_v30 = vmul.f32 %v3479_v31, %v2011_v45 }
 0x2c5   : > { %v3593_v43 = vld [vmem:[#allocation1] sm:$0xff]  ;;  %2550 = vmatpush.bf16.msrb.mxu2 %v2831_v48  ;;  %v1747_v48 = vrot.slane %v3613_v52, 5 }
 0x2c6   : > { %2297 = vst [vmem:[#allocation1 + $0x4] ss:$9 sm:$0xff] %v2108_v63  ;;  %v1918_v63 = vadd.f32 %v3443_v15, %v1740_v49 }
 0x2c7   : > { %2293 = vst [vmem:[#allocation1] ss:$9 sm:$0xff] %v2104_v1  ;;  %v1919_v1 = vadd.f32 %v3446_v16, %v1741_v50  ;;  %v1748_v50 = vrot.slane %v3613_v52, 6 }
 0x2c8   : > { %2294 = vst [vmem:[#allocation1 + $0x1] ss:$9 sm:$0xff] %v2105_v7  ;;  %v2005_v7 = vmax.f32 %v1917_v59, 0.0  ;;  %v2006_v9 = vmax.f32 %v1918_v63, 0.0  ;;  %v2122_v59 = vmul.f32 %v3490_v53, %v2012_v47 }
 0x2c9   : > { %2295 = vst [vmem:[#allocation1 + $0x2] ss:$9 sm:$0xff] %v2106_v19  ;;  %v1921_v19 = vadd.f32 %v3452_v21, %v3613_v52  ;;  %2551 = vmatpush.bf16.msrb.mxu2 %v2830_v61  ;;  %v1927_v61 = vadd.f32 %v3446_v16, %v1748_v50 }
 0x2ca   : > { %2296 = vst [vmem:[#allocation1 + $0x3] ss:$9 sm:$0xff] %v2107_v11  ;;  %v3605_v40 = vpop.f32.mrf.mxu2  ;;  %v2007_v11 = vmax.f32 %v1919_v1, 0.0  ;;  %v1678_v1 = vpop.f32.mrf.mxu1 }
 0x2cb   : > { %2298 = vst [vmem:[#allocation1 + $0x5] ss:$9 sm:$0xff] %v2109_v32  ;;  %v2009_v38 = vmax.f32 %v1921_v19, 0.0  ;;  %v2015_v2 = vmax.f32 %v1927_v61, 0.0  ;;  %v1753_v33 = vrot.slane %v1678_v1, 4  ;;  %v1929_v36 = vadd.f32 %v3443_v15, %v1678_v1 }
 0x2cc   : > { %2299 = vst [vmem:[#allocation1 + $0x6] ss:$9 sm:$0xff] %v2110_v37  ;;  %v2115_v37 = vmul.f32 %v3440_v14, %v2005_v7  ;;  %v2117_v44 = vmul.f32 %v3467_v25, %v2007_v11  ;;  %v1750_v7 = vrot.slane %v1678_v1, 1  ;;  %v1928_v11 = vadd.f32 %v3438_v13, %v1749_v22 }
 0x2cd   : > { %2300 = vst [vmem:[#allocation1 + $0x7] ss:$9 sm:$0xff] %v2111_v3  ;;  %v2116_v3 = vmul.f32 %v3464_v24, %v2006_v9  ;;  %v2119_v49 = vmul.f32 %v3473_v28, %v2009_v38  ;;  %v1751_v9 = vrot.slane %v1678_v1, 2  ;;  %v2125_v26 = vmul.f32 %v3509_v8, %v2015_v2 }
 0x2ce   : > { %v1754_v52 = vrot.slane %v1678_v1, 5  ;;  %v1755_v38 = vrot.slane %v1678_v1, 6  ;;  %v1933_v45 = vadd.f32 %v3455_v41, %v1753_v33 }
 0x2d2   : > { %v3615_v54 = vpop.f32.mrf.mxu2 }
 0x2d4   : > { %v3619_v58 = vld [vmem:[#allocation1] sm:$0xff] }
 0x2d5   : > { %2302 = vst [vmem:[#allocation1] ss:$9 sm:$0xff] %v2112_v51  ;;  %v2120_v51 = vmul.f32 %v3476_v29, %v2010_v42  ;;  %v2016_v42 = vmax.f32 %v1928_v11, 0.0 }
 0x2d6   : > { %2303 = vst [vmem:[#allocation1 + $0x1] ss:$9 sm:$0xff] %v2113_v57  ;;  %v1925_v57 = vadd.f32 %v3438_v13, %v1746_v62  ;;  %v1934_v62 = vadd.f32 %v3458_v46, %v1754_v52 }
 0x2d7   : > { %2304 = vst [vmem:[#allocation1 + $0x2] ss:$9 sm:$0xff] %v2114_v60  ;;  %v1926_v60 = vadd.f32 %v3443_v15, %v1747_v48  ;;  %v1935_v48 = vadd.f32 %v3461_v23, %v1755_v38  ;;  %v2126_v50 = vmul.f32 %v3440_v14, %v2016_v42  ;;  %v1761_v42 = vrot.slane %v3589_v20, 5 }
 0x2d8   : > { %v2013_v63 = vmax.f32 %v1925_v57, 0.0 }
 0x2d9   : > { %v2014_v0 = vmax.f32 %v1926_v60, 0.0  ;;  %v2022_v60 = vmax.f32 %v1934_v62, 0.0 }
 0x2da   : > { %v1688_v32 = vpop.f32.mrf.mxu2  ;;  %v2123_v5 = vmul.f32 %v3503_v4, %v2013_v63  ;;  %v1756_v63 = vrot.slane %v1678_v1, 7 }
 0x2db   : > { %v2124_v19 = vmul.f32 %v3506_v6, %v2014_v0  ;;  %v1752_v32 = vrot.slane %v1678_v1, 3  ;;  %v2023_v0 = vmax.f32 %v1935_v48, 0.0  ;;  %v1937_v1 = vadd.f32 %v3443_v15, %v3589_v20 }
 0x2dc   : > { %v1763_v48 = vrot.slane %v3589_v20, 7 }
 0x2dd   : > { %v2133_v11 = vmul.f32 %v3490_v53, %v2023_v0  ;;  %v2025_v33 = vmax.f32 %v1937_v1, 0.0 }
 0x2de   : > { %v3636_v12 = vld [vmem:[#allocation1] sm:$0xff] }
 0x2df   : > { %2306 = vst [vmem:[#allocation1] ss:$9 sm:$0xff] %v2115_v37  ;;  %v1930_v37 = vadd.f32 %v3446_v16, %v1750_v7  ;;  %v1757_v7 = vrot.slane %v3589_v20, 1 }
 0x2e0   : > { %2307 = vst [vmem:[#allocation1 + $0x1] ss:$9 sm:$0xff] %v2116_v3  ;;  %v1931_v3 = vadd.f32 %v3449_v17, %v1751_v9  ;;  %v1936_v9 = vadd.f32 %v3438_v13, %v1756_v63 }
 0x2e1   : > { %2308 = vst [vmem:[#allocation1 + $0x2] ss:$9 sm:$0xff] %v2117_v44  ;;  %v1932_v44 = vadd.f32 %v3452_v21, %v1752_v32  ;;  %v2018_v47 = vmax.f32 %v1930_v37, 0.0  ;;  %v1759_v37 = vrot.slane %v3589_v20, 3 }
 0x2e2   : > { %2309 = vst [vmem:[#allocation1 + $0x3] ss:$9 sm:$0xff] %v2118_v18  ;;  %v2017_v18 = vmax.f32 %v1929_v36, 0.0  ;;  %v2024_v32 = vmax.f32 %v1936_v9, 0.0  ;;  %v1758_v36 = vrot.slane %v3589_v20, 2 }
 0x2e3   : > { %2310 = vst [vmem:[#allocation1 + $0x4] ss:$9 sm:$0xff] %v2119_v49  ;;  %v2019_v49 = vmax.f32 %v1931_v3, 0.0  ;;  %v2128_v61 = vmul.f32 %v3467_v25, %v2018_v47  ;;  %v1760_v3 = vrot.slane %v3589_v20, 4 }
 0x2e4   : > { %2311 = vst [vmem:[#allocation1 + $0x5] ss:$9 sm:$0xff] %v2120_v51  ;;  %v2020_v51 = vmax.f32 %v1932_v44, 0.0  ;;  %v2127_v57 = vmul.f32 %v3464_v24, %v2017_v18  ;;  %v2134_v38 = vmul.f32 %v3503_v4, %v2024_v32  ;;  %v2135_v44 = vmul.f32 %v3506_v6, %v2025_v33 }
 0x2e5   : > { %2312 = vst [vmem:[#allocation1 + $0x6] ss:$9 sm:$0xff] %v2121_v30  ;;  %v2021_v30 = vmax.f32 %v1933_v45, 0.0  ;;  %v2129_v22 = vmul.f32 %v3470_v27, %v2019_v49  ;;  %v1762_v18 = vrot.slane %v3589_v20, 6  ;;  %v1939_v62 = vadd.f32 %v3438_v13, %v1758_v36 }
 0x2e6   : > { %2313 = vst [vmem:[#allocation1 + $0x7] ss:$9 sm:$0xff] %v2122_v59  ;;  %v2130_v2 = vmul.f32 %v3473_v28, %v2020_v51  ;;  %v1940_v49 = vadd.f32 %v3443_v15, %v1759_v37  ;;  %v1942_v51 = vadd.f32 %v3449_v17, %v1761_v42  ;;  %v1945_v20 = vadd.f32 %v3458_v46, %v3605_v40 }
 0x2e7   : > { %v1765_v33 = vrot.slane %v3605_v40, 2  ;;  %v1766_v37 = vrot.slane %v3605_v40, 3 }
 0x2e8   : > { %v2028_v63 = vmax.f32 %v1940_v49, 0.0 }
 0x2ea   : > { %v2138_v9 = vmul.f32 %v3464_v24, %v2028_v63 }
 0x2ed   : > { %v3653_v10 = vld [vmem:[#allocation1] sm:$0xff] }
 0x2ee   : > { %2315 = vst [vmem:[#allocation1] ss:$9 sm:$0xff] %v2123_v5  ;;  %v2131_v5 = vmul.f32 %v3476_v29, %v2021_v30  ;;  %v1764_v30 = vrot.slane %v3605_v40, 1 }
 0x2ef   : > { %2316 = vst [vmem:[#allocation1 + $0x1] ss:$9 sm:$0xff] %v2124_v19  ;;  %v2132_v19 = vmul.f32 %v3479_v31, %v2022_v60  ;;  %v2027_v60 = vmax.f32 %v1939_v62, 0.0  ;;  %v1948_v62 = vadd.f32 %v3443_v15, %v1766_v37 }
 0x2f0   : > { %2317 = vst [vmem:[#allocation1 + $0x2] ss:$9 sm:$0xff] %v2125_v26  ;;  %v1938_v26 = vadd.f32 %v3446_v16, %v1757_v7 }
 0x2f1   : > { %v2137_v7 = vmul.f32 %v3440_v14, %v2027_v60  ;;  %v2036_v49 = vmax.f32 %v1948_v62, 0.0 }
 0x2f2   : > { %v2026_v52 = vmax.f32 %v1938_v26, 0.0  ;;  %v2033_v26 = vmax.f32 %v1945_v20, 0.0 }
 0x2f4   : > { %v2136_v47 = vmul.f32 %v3509_v8, %v2026_v52  ;;  %v2143_v42 = vmul.f32 %v3479_v31, %v2033_v26 }
 0x2f7   : > { %v3666_v59 = vld [vmem:[#allocation1] sm:$0xff] }
 0x2f8   : > { %2319 = vst [vmem:[#allocation1] ss:$9 sm:$0xff] %v2126_v50  ;;  %v1941_v50 = vadd.f32 %v3446_v16, %v1760_v3  ;;  %v1767_v3 = vrot.slane %v3605_v40, 4 }
 0x2f9   : > { %2320 = vst [vmem:[#allocation1 + $0x1] ss:$9 sm:$0xff] %v2127_v57  ;;  %v1943_v57 = vadd.f32 %v3452_v21, %v1762_v18 }
 0x2fa   : > { %2321 = vst [vmem:[#allocation1 + $0x2] ss:$9 sm:$0xff] %v2128_v61  ;;  %v1944_v61 = vadd.f32 %v3455_v41, %v1763_v48  ;;  %v2029_v0 = vmax.f32 %v1941_v50, 0.0  ;;  %v1768_v50 = vrot.slane %v3605_v40, 5 }
 0x2fb   : > { %2322 = vst [vmem:[#allocation1 + $0x3] ss:$9 sm:$0xff] %v2129_v22  ;;  %v2030_v22 = vmax.f32 %v1942_v51, 0.0 }
 0x2fc   : > { %2323 = vst [vmem:[#allocation1 + $0x4] ss:$9 sm:$0xff] %v2130_v2  ;;  %v1946_v2 = vadd.f32 %v3461_v23, %v1764_v30  ;;  %v2139_v1 = vmul.f32 %v3467_v25, %v2029_v0  ;;  %v1769_v30 = vrot.slane %v3605_v40, 6  ;;  %v1950_v0 = vadd.f32 %v3438_v13, %v1768_v50 }
 0x2fd   : > { %2324 = vst [vmem:[#allocation1 + $0x5] ss:$9 sm:$0xff] %v2131_v5  ;;  %v2031_v5 = vmax.f32 %v1943_v57, 0.0  ;;  %v2140_v32 = vmul.f32 %v3470_v27, %v2030_v22  ;;  %v1770_v57 = vrot.slane %v3605_v40, 7  ;;  %v1771_v22 = vrot.slane %v3615_v54, 1 }
 0x2fe   : > { %2325 = vst [vmem:[#allocation1 + $0x6] ss:$9 sm:$0xff] %v2132_v19  ;;  %v2032_v19 = vmax.f32 %v1944_v61, 0.0  ;;  %v2034_v36 = vmax.f32 %v1946_v2, 0.0  ;;  %v2146_v61 = vmul.f32 %v3506_v6, %v2036_v49  ;;  %v1951_v2 = vadd.f32 %v3443_v15, %v1769_v30 }
 0x2ff   : > { %2326 = vst [vmem:[#allocation1 + $0x7] ss:$9 sm:$0xff] %v2133_v11  ;;  %v2141_v52 = vmul.f32 %v3473_v28, %v2031_v5  ;;  %v1772_v5 = vrot.slane %v3615_v54, 2  ;;  %v1952_v40 = vadd.f32 %v3446_v16, %v1770_v57  ;;  %v1954_v26 = vadd.f32 %v3452_v21, %v1771_v22 }
 0x300   : > { %v2144_v18 = vmul.f32 %v3490_v53, %v2034_v36  ;;  %v2383_v21 = vsel %vm2374_vm10, %v3562_v56, -inf  ;;  %v1776_v56 = vrot.slane %v3615_v54, 6 }
 0x301   : > { %v2040_v36 = vmax.f32 %v1952_v40, 0.0  ;;  %v2384_v49 = vmax.f32 %v3549_v35, %v2383_v21 }
 0x303   : > { %v2150_v62 = vmul.f32 %v3467_v25, %v2040_v36 }
 0x306   : > { %v3685_v45 = vld [vmem:[#allocation1] sm:$0xff] }
 0x307   : > { %2328 = vst [vmem:[#allocation1] ss:$9 sm:$0xff] %v2134_v38  ;;  %v2142_v38 = vmul.f32 %v3476_v29, %v2032_v19  ;;  %v1774_v19 = vrot.slane %v3615_v54, 4 }
 0x308   : > { %2329 = vst [vmem:[#allocation1 + $0x1] ss:$9 sm:$0xff] %v2135_v44  ;;  %v1947_v44 = vadd.f32 %v3438_v13, %v1765_v33  ;;  %v1955_v33 = vadd.f32 %v3455_v41, %v1772_v5 }
 0x309   : > { %2330 = vst [vmem:[#allocation1 + $0x2] ss:$9 sm:$0xff] %v2136_v47  ;;  %v1949_v47 = vadd.f32 %v3446_v16, %v1767_v3  ;;  %v1957_v37 = vadd.f32 %v3461_v23, %v1774_v19  ;;  %v2391_v23 = vsel %vm2374_vm10, %v3593_v43, -inf  ;;  %v1777_v43 = vrot.slane %v3615_v54, 7 }
 0x30a   : > { %v2035_v48 = vmax.f32 %v1947_v44, 0.0 }
 0x30b   : > { %v2037_v51 = vmax.f32 %v1949_v47, 0.0  ;;  %v2045_v47 = vmax.f32 %v1957_v37, 0.0  ;;  %v1960_v57 = vadd.f32 %v3446_v16, %v1777_v43 }
 0x30c   : > { %v2145_v60 = vmul.f32 %v3503_v4, %v2035_v48  ;;  %v2399_v48 = vsel %vm2374_vm10, %v3636_v12, -inf }
 0x30d   : > { %v2147_v20 = vmul.f32 %v3509_v8, %v2037_v51  ;;  %v2400_v35 = vmax.f32 %v3619_v58, %v2399_v48 }
 0x310   : > { %v3702_v11 = vld [vmem:[#allocation1] sm:$0xff] }
 0x311   : > { %2332 = vst [vmem:[#allocation1] ss:$9 sm:$0xff] %v2137_v7  ;;  %v1773_v7 = vrot.slane %v3615_v54, 3  ;;  %v2415_v12 = vsel %vm2374_vm10, %v3702_v11, -inf  ;;  %v2385_v11 = vrot.slane %v2384_v49, 4 }
 0x312   : > { %2333 = vst [vmem:[#allocation1 + $0x1] ss:$9 sm:$0xff] %v2138_v9  ;;  %v1953_v9 = vadd.f32 %v3449_v17, %v3615_v54 }
 0x313   : > { %2334 = vst [vmem:[#allocation1 + $0x2] ss:$9 sm:$0xff] %v2139_v1  ;;  %v2038_v1 = vmax.f32 %v1950_v0, 0.0 }
 0x314   : > { %2335 = vst [vmem:[#allocation1 + $0x3] ss:$9 sm:$0xff] %v2140_v32  ;;  %v2039_v32 = vmax.f32 %v1951_v2, 0.0 }
 0x315   : > { %2336 = vst [vmem:[#allocation1 + $0x4] ss:$9 sm:$0xff] %v2141_v52  ;;  %v1956_v52 = vadd.f32 %v3458_v46, %v1773_v7  ;;  %v2148_v3 = vmul.f32 %v3440_v14, %v2038_v1  ;;  %v2375_v46 = vsel %vm2374_vm10, %v3531_v55, -inf  ;;  %v1775_v14 = vrot.slane %v3615_v54, 5 }
 0x316   : > { %2337 = vst [vmem:[#allocation1 + $0x5] ss:$9 sm:$0xff] %v2142_v38  ;;  %v2041_v38 = vmax.f32 %v1953_v9, 0.0  ;;  %v2149_v44 = vmul.f32 %v3464_v24, %v2039_v32  ;;  %v2407_v55 = vsel %vm2374_vm10, %v3666_v59, -inf  ;;  %v2155_v54 = vmul.f32 %v3490_v53, %v2045_v47 }
 0x317   : > { %2338 = vst [vmem:[#allocation1 + $0x6] ss:$9 sm:$0xff] %v2143_v42  ;;  %v2042_v42 = vmax.f32 %v1954_v26, 0.0  ;;  %v2044_v41 = vmax.f32 %v1956_v52, 0.0  ;;  %v1958_v59 = vadd.f32 %v3438_v13, %v1775_v14 }
 0x318   : > { %2339 = vst [vmem:[#allocation1 + $0x7] ss:$9 sm:$0xff] %v2144_v18  ;;  %v2043_v18 = vmax.f32 %v1955_v33, 0.0  ;;  %v2151_v24 = vmul.f32 %v3470_v27, %v2041_v38  ;;  %v2392_v27 = vmax.f32 %v3575_v39, %v2391_v23  ;;  %v1959_v39 = vadd.f32 %v3443_v15, %v1776_v56 }
 0x319   : > { %v2152_v25 = vmul.f32 %v3473_v28, %v2042_v42  ;;  %v2154_v51 = vmul.f32 %v3479_v31, %v2044_v41  ;;  %v2376_v28 = vmax.f32 %v3516_v34, %v2375_v46  ;;  %v2416_v31 = vmax.f32 %v3685_v45, %v2415_v12 }
 0x31a   : > { %v2153_v50 = vmul.f32 %v3476_v29, %v2043_v18  ;;  %v2408_v29 = vmax.f32 %v3653_v10, %v2407_v55  ;;  %v2393_v34 = vrot.slane %v2392_v27, 4  ;;  %v2046_v13 = vmax.f32 %v1958_v59, 0.0 }
 0x31b   : > { %v2047_v53 = vmax.f32 %v1959_v39, 0.0  ;;  %v2417_v22 = vrot.slane %v2416_v31, 4  ;;  %v2048_v10 = vmax.f32 %v1960_v57, 0.0 }
 0x31c   : > { %v2409_v0 = vrot.slane %v2408_v29, 4  ;;  %v2394_v2 = vmax.f32 %v2392_v27, %v2393_v34  ;;  %v2156_v45 = vmul.f32 %v3503_v4, %v2046_v13 }
 0x31d   : > { %v2157_v16 = vmul.f32 %v3506_v6, %v2047_v53  ;;  %v2158_v1 = vmul.f32 %v3509_v8, %v2048_v10 }
 0x31e   : > { %v2410_v7 = vmax.f32 %v2408_v29, %v2409_v0  ;;  %v2395_v26 = vrot.slane %v2394_v2, 2 }
 0x31f   : > { %v3721_v63 = vld [vmem:[#allocation1] sm:$0xff] }
 0x320   : > { %2341 = vst [vmem:[#allocation1] ss:$9 sm:$0xff] %v2145_v60  ;;  %v2377_v60 = vrot.slane %v2376_v28, 4  ;;  %v2411_v52 = vrot.slane %v2410_v7, 2 }
 0x321   : > { %2342 = vst [vmem:[#allocation1 + $0x1] ss:$9 sm:$0xff] %v2146_v61  ;;  %v2401_v61 = vrot.slane %v2400_v35, 4 }
 0x322   : > { %2343 = vst [vmem:[#allocation1 + $0x2] ss:$9 sm:$0xff] %v2147_v20  ;;  %v2386_v20 = vmax.f32 %v2384_v49, %v2385_v11  ;;  %v2378_v5 = vmax.f32 %v2376_v28, %v2377_v60  ;;  %v2412_v6 = vmax.f32 %v2410_v7, %v2411_v52 }
 0x323   : > { %v2402_v40 = vmax.f32 %v2400_v35, %v2401_v61 }
 0x324   : > { %v2387_v9 = vrot.slane %v2386_v20, 2  ;;  %v2379_v33 = vrot.slane %v2378_v5, 2  ;;  %v2413_v23 = vrot.slane %v2412_v6, 1 }
 0x325   : > { %v2403_v36 = vrot.slane %v2402_v40, 2 }
 0x326   : > { %v2388_v37 = vmax.f32 %v2386_v20, %v2387_v9  ;;  %v2380_v42 = vmax.f32 %v2378_v5, %v2379_v33  ;;  %v2936_v9 = vld [vmem:[%s3819_s6] ss:$0 sm:$0xff] }
 0x328   : > { %v2389_v18 = vrot.slane %v2388_v37, 1  ;;  %v2381_v41 = vrot.slane %v2380_v42, 1 }
 0x329   : > { %v2344_v17 = vld [vmem:[#allocation1] sm:$0xff] }
 0x32a   : > { %2345 = vst [vmem:[#allocation1] ss:$9 sm:$0xff] %v2148_v3  ;;  %v2423_v30 = vsel %vm2374_vm10, %v2344_v17, -inf  ;;  %v2396_v3 = vmax.f32 %v2394_v2, %v2395_v26  ;;  %v2390_v47 = vmax.f32 %v2388_v37, %v2389_v18  ;;  %v2382_v49 = vmax.f32 %v2380_v42, %v2381_v41 }
 0x32b   : > { %2346 = vst [vmem:[#allocation1 + $0x1] ss:$9 sm:$0xff] %v2149_v44  ;;  %v2424_v58 = vmax.f32 %v3721_v63, %v2423_v30  ;;  %v2418_v63 = vmax.f32 %v2416_v31, %v2417_v22  ;;  %v2404_v44 = vmax.f32 %v2402_v40, %v2403_v36 }
 0x32c   : > { %2347 = vst [vmem:[#allocation1 + $0x2] ss:$9 sm:$0xff] %v2150_v62  ;;  %v2397_v21 = vrot.slane %v2396_v3, 1  ;;  %v2439_v59 = vpack.c.bf16 %v2382_v49, %v2382_v49 }
 0x32d   : > { %2348 = vst [vmem:[#allocation1 + $0x3] ss:$9 sm:$0xff] %v2151_v24  ;;  %v2425_v15 = vrot.slane %v2424_v58, 4  ;;  %v2419_v38 = vrot.slane %v2418_v63, 2  ;;  %v2405_v46 = vrot.slane %v2404_v44, 1 }
 0x32e   : > { %2349 = vst [vmem:[#allocation1 + $0x4] ss:$9 sm:$0xff] %v2152_v25  ;;  %v2398_v56 = vmax.f32 %v2396_v3, %v2397_v21  ;;  %v2475_v60 = vunpack.c.l.b16 %v2439_v59 }
 0x32f   : > { %2350 = vst [vmem:[#allocation1 + $0x5] ss:$9 sm:$0xff] %v2153_v50  ;;  %v2426_v32 = vmax.f32 %v2424_v58, %v2425_v15  ;;  %v2420_v17 = vmax.f32 %v2418_v63, %v2419_v38  ;;  %v2406_v55 = vmax.f32 %v2404_v44, %v2405_v46  ;;  %v2414_v50 = vmax.f32 %v2412_v6, %v2413_v23 }
 0x330   : > { %2351 = vst [vmem:[#allocation1 + $0x6] ss:$9 sm:$0xff] %v2154_v51  ;;  %v2440_v51 = vpack.c.bf16 %v2390_v47, %v2390_v47  ;;  %v2441_v35 = vpack.c.bf16 %v2398_v56, %v2398_v56 }
 0x331   : > { %2352 = vst [vmem:[#allocation1 + $0x7] ss:$9 sm:$0xff] %v2155_v54  ;;  %v2427_v4 = vrot.slane %v2426_v32, 2  ;;  %v2421_v24 = vrot.slane %v2420_v17, 1  ;;  %v2442_v54 = vpack.c.bf16 %v2406_v55, %v2406_v55  ;;  %v2443_v29 = vpack.c.bf16 %v2414_v50, %v2414_v50 }
 0x332   : > { %v2476_v31 = vunpack.c.l.b16 %v2440_v51  ;;  %v2477_v34 = vunpack.c.l.b16 %v2441_v35 }
 0x333   : > { %v2428_v62 = vmax.f32 %v2426_v32, %v2427_v4  ;;  %v2422_v27 = vmax.f32 %v2420_v17, %v2421_v24  ;;  %v2478_v61 = vunpack.c.l.b16 %v2442_v54  ;;  %v2479_v13 = vunpack.c.l.b16 %v2443_v29 }
 0x334   : > { %v2483_v20 = vsel %vm515_vm3, %v2476_v31, %v2475_v60 }
 0x335   : > { %v2429_v25 = vrot.slane %v2428_v62, 1  ;;  %v2444_v11 = vpack.c.bf16 %v2422_v27, %v2422_v27  ;;  %v2484_v10 = vsel %vm519_vm4, %v2477_v34, %v2483_v20 }
 0x336   : > { %v2485_v15 = vsel %vm523_vm5, %v2478_v61, %v2484_v10 }
 0x337   : > { %v2430_v28 = vmax.f32 %v2428_v62, %v2429_v25  ;;  %v2480_v53 = vunpack.c.l.b16 %v2444_v11  ;;  %v2487_v5 = vsel %vm2486_vm11, %v2479_v13, %v2485_v15 }
 0x338   : > { %v2353_v19 = vld [vmem:[#allocation1] sm:$0xff] }
 0x339   : > { %2354 = vst [vmem:[#allocation1] ss:$9 sm:$0xff] %v2156_v45  ;;  %v2445_v57 = vpack.c.bf16 %v2430_v28, %v2430_v28  ;;  %v2489_v45 = vsel %vm2488_vm12, %v2480_v53, %v2487_v5 }
 0x33a   : > { %2355 = vst [vmem:[#allocation1 + $0x1] ss:$9 sm:$0xff] %v2157_v16 }
 0x33b   : > { %2356 = vst [vmem:[#allocation1 + $0x2] ss:$9 sm:$0xff] %v2158_v1  ;;  %v2481_v22 = vunpack.c.l.b16 %v2445_v57 }
 0x33d   : > { %v2491_v7 = vsel %vm2490_vm13, %v2481_v22, %v2489_v45 }
 0x342   : > { %v2357_v8 = vld [vmem:[#allocation1] sm:$0xff] }
 0x343   : > { %v2431_v14 = vsel %vm2374_vm10, %v2357_v8, -inf }
 0x344   : > { %v2432_v48 = vmax.f32 %v2353_v19, %v2431_v14 }
 0x346   : > { %v2433_v43 = vrot.slane %v2432_v48, 4 }
 0x348   : > { %v2434_v12 = vmax.f32 %v2432_v48, %v2433_v43 }
 0x34a   : > { %v2435_v30 = vrot.slane %v2434_v12, 2 }
 0x34c   : > { %v2436_v39 = vmax.f32 %v2434_v12, %v2435_v30 }
 0x34e   : > { %v2437_v58 = vrot.slane %v2436_v39, 1 }
 0x350   : > { %v2438_v0 = vmax.f32 %v2436_v39, %v2437_v58 }
 0x352   : > { %v2446_v2 = vpack.c.bf16 %v2438_v0, %v2438_v0 }
 0x354   : > { %v2482_v40 = vunpack.c.l.b16 %v2446_v2 }
 0x356   : > { %v2493_v16 = vsel %vm2492_vm14, %v2482_v40, %v2491_v7 }
 0x357   : > { %v2494_v19 = vpack.c.b16 %v2493_v16, %v2493_v16 }
 0x359   : > { %2552 = vmatmul.bf16.vlgmr.msrb.gmra.mxu2 %v2494_v19 }
 0x3dc   : > { %v2553_v63 = vpop.f32.mrf.mxu2 }
 0x3dd   : > { %v2554_v1 = vadd.f32 %v2936_v9, %v2553_v63 }
 0x3df   : > { %2557 = vmax.xlane.f32.xlu1 %v2554_v1 }
 0x3e4   : > { %v2555_v26 = vpop.f32.mrf.mxu2 }
 0x452   : > { %v2558_v32 = vpop.xlane.xlu1 %2557 }
 0x453   : > { %v2559_v33 = vsub.f32 %v2554_v1, %v2558_v32 }
 0x455   : > { %v2560_v36 = vmul.f32 1.442695, %v2559_v33 }
 0x457   : > { %2937 = vpow2.f32 %v2560_v36 }
 0x45d   : > { %v2938_v52 = vpop.eup %2937 }
 0x45e   : > { %2562 = vadd.xlane.f32.xlu2 %v2938_v52 }
 0x4d1   : > { %v2563_v37 = vpop.xlane.xlu2 %2562 }
 0x4d2   : > { %2939 = vrcp.f32 %v2563_v37 }
 0x4d8   : > { %v2940_v38 = vpop.eup %2939 }
 0x4d9   : > { %v2565_v3 = vmul.f32 %v2940_v38, %v2938_v52 }
 0x4db   : > { %2566 = vst [vmem:[%s303_s22] sm:$0xff] %v2565_v3 }
 0x4dc   : > { %3028 = shalt.err (!%p3025_p8)
}
 0x4dd   : > { %2862 = dma.vmem_to_hbm [thread:$0]  (%p3161_p5), %s2581_s23, 128, %s2583_s29, %s2568_s8  }
 0x4de PF: > { %p2879_p9 = scmp.ge.s32.totalorder %s3071_s27, 2  ;;  %s2594_s16 = sand.u32 1, %s3059_s24  }
 0x4df   : > { %s2595_s19 = scalar_lea.sflag [#allocation4], %s2594_s16 }
 0x4e0   : > { %p2872_p10 = pnand %p2879_p9, %p3165_p6 }
 0x4e2   : > { %p2873_p11 = pneg %p2872_p10 }
 0x4e4   : > { %3054 = dma.done.wait (%p2873_p11), %s2595_s19, 128  }
 0x4e5   : > { %3056 = vsyncadd (%p2873_p11), %s2595_s19, 4294967168  ;;  %p19_p12 = scmp.ge.s32.totalorder %s3148_s30, 4   ;;  %s3824_s24 = smov %s3063_s25 }
 0x4e6   : > { %s3825_s25 = smov %s3067_s26  ;;  %s3826_s26 = smov %s3159_s10 }
 0x4e7   : > { %s3827_s27 = smov %s3148_s30  ;;  %21 = sbr.rel (!%p19_p12) target bundleno = 5 (0x5), region = 119 }
 0x4ec   :  { %2601 = vsyncpa [#allocation3], 1 }
 0x4ed   :  { %2603 = vsyncpa [#allocation3 + $0x1], 1 }
 0x4ee   :  { %2604 = vsyncpa [#allocation6], 1 }
 0x4ef   :  { %2605 = vsyncpa [#allocation4], 1 }
 0x4f0   :  { %2607 = vsyncpa [#allocation4 + $0x1], 1 }

</bundles_post_ra>
